<compile_context>
chip_gen: v6e
topology: v6e:2x2x1
jax: 0.10.0
libtpu: 0.0.40
codegen_flags: <defaults>
</compile_context>

<pallas_src>
import functools
import math

import jax
import jax.numpy as jnp
import numpy as np
from jax.experimental import pallas as pl
from jax.experimental.pallas import tpu as pltpu

LRELU_SLOPE = 0.02


# ----------------------------- Pallas kernel -------------------------------
def _conv_lrelu_kernel(x_ref, w_ref, b_ref, o_ref, xp_ref, cols_ref, *,
                       H, W, KH, KW):
    """Replicate-pad + 2D conv (stride 1) + bias + LeakyReLU, NB images/step.

    x_ref:    (NB, Cin, H*W)          unpadded images, spatial flattened (NCHW)
    w_ref:    (Cout, KH*KW*Cin)       weight, column = (kh*KW+kw)*Cin + cin
    b_ref:    (Cout, 1)
    o_ref:    (NB, Cout, H*W)         compact NCHW output (no garbage columns)
    xp_ref:   (Cin, Hp*Wp + KW-1)     VMEM scratch: padded image, row stride Wp
    cols_ref: (KH*KW*Cin, H*Wp)       VMEM scratch: stacked tap slices
    """
    NB, Cin, _ = x_ref.shape
    ph, pw = KH // 2, KW // 2
    Hp, Wp = H + 2 * ph, W + 2 * pw
    L = H * Wp                                   # matmul width (padded row stride)

    # Deterministically clear the KW-1 tap-slack lanes once (they only feed the
    # pad columns that are dropped in step 4, but keep them defined).
    if KW > 1:
        xp_ref[:, Hp * Wp:] = jnp.zeros((Cin, KW - 1), jnp.float32)

    for nb in range(NB):
        # 1) build the replicate-padded image in VMEM (all-static small copies,
        #    replaces the wrapper-side jnp.pad HBM round trip of v2).
        for r in range(Hp):
            rs = min(max(r - ph, 0), H - 1)                    # clamped source row
            row = x_ref[nb, :, rs * W:(rs + 1) * W]            # (Cin, W)
            base = r * Wp
            xp_ref[:, base + pw: base + pw + W] = row
            if pw:
                left, right = row[:, :1], row[:, W - 1:]
                if pw > 1:
                    left = jnp.broadcast_to(left, (Cin, pw))
                    right = jnp.broadcast_to(right, (Cin, pw))
                xp_ref[:, base: base + pw] = left              # left edge replicate
                xp_ref[:, base + pw + W: base + Wp] = right    # right edge replicate

        # 2) stack the KH*KW taps into a (KH*KW*Cin, L) matrix (lane-dense slices).
        for kh in range(KH):
            for kw in range(KW):
                t = kh * KW + kw
                s0 = kh * Wp + kw                              # static lane offset
                cols_ref[t * Cin:(t + 1) * Cin, :] = xp_ref[:, s0:s0 + L]

        # 3) single fused K = KH*KW*Cin MXU contraction + bias + LeakyReLU.
        acc = jnp.dot(w_ref[...], cols_ref[...],
                      preferred_element_type=jnp.float32)      # (Cout, L)
        acc = acc + b_ref[...]
        acc = jnp.maximum(acc, LRELU_SLOPE * acc)              # LeakyReLU(0.02)

        # 4) compact: drop the KW-1 pad columns of each row; final HBM block is
        #    a fully lane-dense (Cout, H*W) store.
        for r in range(H):
            o_ref[nb, :, r * W:(r + 1) * W] = \
                acc[:, r * Wp: r * Wp + W].astype(o_ref.dtype)


# ------------------------------- wrapper ------------------------------------
def conv2d_block(x, weight, bias, *, strides=1, num_steps=None):
    """Forward of Conv2DBlock: replicate-padded conv2d + LeakyReLU(0.02).

    x:      (N, Cin, H, W)      float32 (NCHW)
    weight: (Cout, Cin, KH, KW) float32 (OIHW)
    bias:   (Cout,)             float32
    returns (N, Cout, H, W)     float32 (NCHW)
    """
    N, Cin, H, W = x.shape
    Cout, Cin_w, KH, KW = weight.shape
    assert Cin_w == Cin
    if strides not in (1, (1, 1)):
        # TODO(synk): stride>1 needs strided tap slices; the configured module
        # instance uses stride=1 so only that path is implemented.
        raise NotImplementedError("Pallas Conv2DBlock kernel supports stride=1 only")

    ph, pw = KH // 2, KW // 2
    Hp, Wp = H + 2 * ph, W + 2 * pw
    L = H * Wp                       # kernel matmul width (padded row stride)
    S = Hp * Wp + (KW - 1)           # padded image + tap-slice tail slack

    if num_steps is None:
        # <=2 grid steps: feeds both v7x TensorCores when N>=2, keeps launch
        # overhead minimal on single-TC v5e/v6e (set num_steps=1 there to fold
        # everything into one launch).
        num_steps = 2 if (N >= 2 and N % 2 == 0) else 1
    assert N % num_steps == 0
    NB = N // num_steps              # images folded into one grid step

    # Free reshapes only — no HBM round trips on the activation path.
    x_flat = x.reshape(N, Cin, H * W).astype(jnp.float32)
    # (Cout, Cin, KH, KW) -> (Cout, KH*KW*Cin): tiny constant re-layout.
    w2 = jnp.transpose(weight, (0, 2, 3, 1)).reshape(Cout, KH * KW * Cin)
    w2 = w2.astype(jnp.float32)
    b2 = bias.reshape(Cout, 1).astype(jnp.float32)

    kern = functools.partial(_conv_lrelu_kernel, H=H, W=W, KH=KH, KW=KW)
    out_flat = pl.pallas_call(
        kern,
        out_shape=jax.ShapeDtypeStruct((N, Cout, H * W), jnp.float32),
        grid=(num_steps,),
        in_specs=[
            pl.BlockSpec((NB, Cin, H * W), lambda i: (i, 0, 0)),
            pl.BlockSpec((Cout, KH * KW * Cin), lambda i: (0, 0)),
            pl.BlockSpec((Cout, 1), lambda i: (0, 0)),
        ],
        out_specs=pl.BlockSpec((NB, Cout, H * W), lambda i: (i, 0, 0)),
        scratch_shapes=[
            pltpu.VMEM((Cin, S), jnp.float32),            # padded image
            pltpu.VMEM((KH * KW * Cin, L), jnp.float32),  # stacked taps
        ],
        compiler_params=pltpu.CompilerParams(
            dimension_semantics=("parallel",)),
    )(x_flat, w2, b2)

    # trailing-dim split of a contiguous array: metadata-only.
    return out_flat.reshape(N, Cout, H, W)


# ------------------------- deterministic parameters --------------------------
def init_params(key, in_channels, out_channels, kh, kw):
    # matches nn.init.kaiming_uniform_(w, a=LRELU_SLOPE, nonlinearity='leaky_relu')
    gain = math.sqrt(2.0 / (1.0 + LRELU_SLOPE ** 2))
    fan_in = in_channels * kh * kw
    bound = gain * math.sqrt(3.0 / fan_in)
    w = jax.random.uniform(key, (out_channels, in_channels, kh, kw),
                           minval=-bound, maxval=bound, dtype=jnp.float32)
    b = jnp.zeros((out_channels,), jnp.float32)       # nn.init.zeros_(bias)
    return w, b


# ---------------------------------- main -------------------------------------
if __name__ == "__main__":
    N, Cin, H, W = 2, 4, 16, 16
    Cout, K = 8, 3

    key = jax.random.PRNGKey(0)
    kx, kw_, kb = jax.random.split(key, 3)
    x = jax.random.normal(kx, (N, Cin, H, W), dtype=jnp.float32)
    weight, _zero_bias = init_params(kw_, Cin, Cout, K, K)
    # module initializes bias to zeros; use a non-zero bias so the in-kernel
    # bias-add path is actually exercised by the check below.
    bias = 0.1 * jax.random.normal(kb, (Cout,), dtype=jnp.float32)

    fwd = jax.jit(conv2d_block, static_argnames=("strides", "num_steps"))
    y = jax.block_until_ready(fwd(x, weight, bias))

    # pure-JAX reference: replicate pad + VALID conv + bias + LeakyReLU(0.02)
    x_pad = jnp.pad(x, ((0, 0), (0, 0), (1, 1), (1, 1)), mode="edge")
    ref = jax.lax.conv_general_dilated(
        x_pad, weight, window_strides=(1, 1), padding="VALID",
        dimension_numbers=("NCHW", "OIHW", "NCHW"))
    ref = ref + bias.reshape(1, Cout, 1, 1)
    ref = jnp.where(ref >= 0, ref, LRELU_SLOPE * ref)

    assert y.shape == (N, Cout, H, W)
    np.testing.assert_allclose(np.asarray(y), np.asarray(ref),
                               rtol=1e-5, atol=1e-5)
    print("KERNEL_OK")
</pallas_src>

<mosaic_0001>
module attributes {stable_mosaic.version = 11 : i64} {
  func.func @_conv_lrelu_kernel(%arg0: i32, %arg1: memref<1x4x256xf32, #tpu.memory_space<vmem>>, %arg2: memref<8x36xf32, #tpu.memory_space<vmem>>, %arg3: memref<8x1xf32, #tpu.memory_space<vmem>>, %arg4: memref<1x8x256xf32, #tpu.memory_space<vmem>>, %arg5: memref<4x326xf32, #tpu.memory_space<vmem>>, %arg6: memref<36x288xf32, #tpu.memory_space<vmem>>) attributes {dimension_semantics = [#tpu.dimension_semantics<parallel>], iteration_bounds = array<i64: 2>, scalar_prefetch = 0 : i64, scratch_operands = 2 : i64, tpu.core_type = #tpu.core_type<tc>, window_params = [{transform_indices = @transform_0, window_bounds = array<i64: 1, 4, 256>}, {pipeline_mode = #tpu.pipeline_mode<synchronous>, transform_indices = @transform_1, window_bounds = array<i64: 8, 36>}, {pipeline_mode = #tpu.pipeline_mode<synchronous>, transform_indices = @transform_2, window_bounds = array<i64: 8, 1>}, {transform_indices = @transform_3, window_bounds = array<i64: 1, 8, 256>}]} {
    %cst = arith.constant 0.000000e+00 : f32
    %0 = vector.broadcast %cst : f32 to vector<4x2xf32>
    %c0 = arith.constant 0 : index
    %c324 = arith.constant 324 : index
    %1 = vector.load %arg5[%c0, %c324] : memref<4x326xf32, #tpu.memory_space<vmem>>, vector<4x2xf32>
    tpu.vector_store %arg5[%c0, %c324], %0 {strides = array<i32>} : memref<4x326xf32, #tpu.memory_space<vmem>>, vector<4x2xf32>,
    %c0_0 = arith.constant 0 : index
    %c0_1 = arith.constant 0 : index
    %c0_2 = arith.constant 0 : index
    %2 = vector.load %arg1[%c0_0, %c0_1, %c0_2] : memref<1x4x256xf32, #tpu.memory_space<vmem>>, vector<1x4x16xf32>
    %3 = vector.shape_cast %2 : vector<1x4x16xf32> to vector<4x16xf32>
    %c0_3 = arith.constant 0 : index
    %c1 = arith.constant 1 : index
    %4 = vector.load %arg5[%c0_3, %c1] : memref<4x326xf32, #tpu.memory_space<vmem>>, vector<4x16xf32>
    tpu.vector_store %arg5[%c0_3, %c1], %3 {strides = array<i32>} : memref<4x326xf32, #tpu.memory_space<vmem>>, vector<4x16xf32>,
    %5 = vector.extract_strided_slice %3 {offsets = [0, 0], sizes = [4, 1], strides = [1, 1]} : vector<4x16xf32> to vector<4x1xf32>
    %6 = vector.extract_strided_slice %3 {offsets = [0, 15], sizes = [4, 1], strides = [1, 1]} : vector<4x16xf32> to vector<4x1xf32>
    %c0_4 = arith.constant 0 : index
    %c0_5 = arith.constant 0 : index
    %7 = vector.load %arg5[%c0_4, %c0_5] : memref<4x326xf32, #tpu.memory_space<vmem>>, vector<4x1xf32>
    tpu.vector_store %arg5[%c0_4, %c0_5], %5 {strides = array<i32>} : memref<4x326xf32, #tpu.memory_space<vmem>>, vector<4x1xf32>,
    %c0_6 = arith.constant 0 : index
    %c17 = arith.constant 17 : index
    %8 = vector.load %arg5[%c0_6, %c17] : memref<4x326xf32, #tpu.memory_space<vmem>>, vector<4x1xf32>
    tpu.vector_store %arg5[%c0_6, %c17], %6 {strides = array<i32>} : memref<4x326xf32, #tpu.memory_space<vmem>>, vector<4x1xf32>,
    %c0_7 = arith.constant 0 : index
    %c0_8 = arith.constant 0 : index
    %c0_9 = arith.constant 0 : index
    %9 = vector.load %arg1[%c0_7, %c0_8, %c0_9] : memref<1x4x256xf32, #tpu.memory_space<vmem>>, vector<1x4x16xf32>
    %10 = vector.shape_cast %9 : vector<1x4x16xf32> to vector<4x16xf32>
    %c0_10 = arith.constant 0 : index
    %c19 = arith.constant 19 : index
    %11 = vector.load %arg5[%c0_10, %c19] : memref<4x326xf32, #tpu.memory_space<vmem>>, vector<4x16xf32>
    tpu.vector_store %arg5[%c0_10, %c19], %10 {strides = array<i32>} : memref<4x326xf32, #tpu.memory_space<vmem>>, vector<4x16xf32>,
    %12 = vector.extract_strided_slice %10 {offsets = [0, 0], sizes = [4, 1], strides = [1, 1]} : vector<4x16xf32> to vector<4x1xf32>
    %13 = vector.extract_strided_slice %10 {offsets = [0, 15], sizes = [4, 1], strides = [1, 1]} : vector<4x16xf32> to vector<4x1xf32>
    %c0_11 = arith.constant 0 : index
    %c18 = arith.constant 18 : index
    %14 = vector.load %arg5[%c0_11, %c18] : memref<4x326xf32, #tpu.memory_space<vmem>>, vector<4x1xf32>
    tpu.vector_store %arg5[%c0_11, %c18], %12 {strides = array<i32>} : memref<4x326xf32, #tpu.memory_space<vmem>>, vector<4x1xf32>,
    %c0_12 = arith.constant 0 : index
    %c35 = arith.constant 35 : index
    %15 = vector.load %arg5[%c0_12, %c35] : memref<4x326xf32, #tpu.memory_space<vmem>>, vector<4x1xf32>
    tpu.vector_store %arg5[%c0_12, %c35], %13 {strides = array<i32>} : memref<4x326xf32, #tpu.memory_space<vmem>>, vector<4x1xf32>,
    %c0_13 = arith.constant 0 : index
    %c0_14 = arith.constant 0 : index
    %c16 = arith.constant 16 : index
    %16 = vector.load %arg1[%c0_13, %c0_14, %c16] : memref<1x4x256xf32, #tpu.memory_space<vmem>>, vector<1x4x16xf32>
    %17 = vector.shape_cast %16 : vector<1x4x16xf32> to vector<4x16xf32>
    %c0_15 = arith.constant 0 : index
    %c37 = arith.constant 37 : index
    %18 = vector.load %arg5[%c0_15, %c37] : memref<4x326xf32, #tpu.memory_space<vmem>>, vector<4x16xf32>
    tpu.vector_store %arg5[%c0_15, %c37], %17 {strides = array<i32>} : memref<4x326xf32, #tpu.memory_space<vmem>>, vector<4x16xf32>,
    %19 = vector.extract_strided_slice %17 {offsets = [0, 0], sizes = [4, 1], strides = [1, 1]} : vector<4x16xf32> to vector<4x1xf32>
    %20 = vector.extract_strided_slice %17 {offsets = [0, 15], sizes = [4, 1], strides = [1, 1]} : vector<4x16xf32> to vector<4x1xf32>
    %c0_16 = arith.constant 0 : index
    %c36 = arith.constant 36 : index
    %21 = vector.load %arg5[%c0_16, %c36] : memref<4x326xf32, #tpu.memory_space<vmem>>, vector<4x1xf32>
    tpu.vector_store %arg5[%c0_16, %c36], %19 {strides = array<i32>} : memref<4x326xf32, #tpu.memory_space<vmem>>, vector<4x1xf32>,
    %c0_17 = arith.constant 0 : index
    %c53 = arith.constant 53 : index
    %22 = vector.load %arg5[%c0_17, %c53] : memref<4x326xf32, #tpu.memory_space<vmem>>, vector<4x1xf32>
    tpu.vector_store %arg5[%c0_17, %c53], %20 {strides = array<i32>} : memref<4x326xf32, #tpu.memory_space<vmem>>, vector<4x1xf32>,
    %c0_18 = arith.constant 0 : index
    %c0_19 = arith.constant 0 : index
    %c32 = arith.constant 32 : index
    %23 = vector.load %arg1[%c0_18, %c0_19, %c32] : memref<1x4x256xf32, #tpu.memory_space<vmem>>, vector<1x4x16xf32>
    %24 = vector.shape_cast %23 : vector<1x4x16xf32> to vector<4x16xf32>
    %c0_20 = arith.constant 0 : index
    %c55 = arith.constant 55 : index
    %25 = vector.load %arg5[%c0_20, %c55] : memref<4x326xf32, #tpu.memory_space<vmem>>, vector<4x16xf32>
    tpu.vector_store %arg5[%c0_20, %c55], %24 {strides = array<i32>} : memref<4x326xf32, #tpu.memory_space<vmem>>, vector<4x16xf32>,
    %26 = vector.extract_strided_slice %24 {offsets = [0, 0], sizes = [4, 1], strides = [1, 1]} : vector<4x16xf32> to vector<4x1xf32>
    %27 = vector.extract_strided_slice %24 {offsets = [0, 15], sizes = [4, 1], strides = [1, 1]} : vector<4x16xf32> to vector<4x1xf32>
    %c0_21 = arith.constant 0 : index
    %c54 = arith.constant 54 : index
    %28 = vector.load %arg5[%c0_21, %c54] : memref<4x326xf32, #tpu.memory_space<vmem>>, vector<4x1xf32>
    tpu.vector_store %arg5[%c0_21, %c54], %26 {strides = array<i32>} : memref<4x326xf32, #tpu.memory_space<vmem>>, vector<4x1xf32>,
    %c0_22 = arith.constant 0 : index
    %c71 = arith.constant 71 : index
    %29 = vector.load %arg5[%c0_22, %c71] : memref<4x326xf32, #tpu.memory_space<vmem>>, vector<4x1xf32>
    tpu.vector_store %arg5[%c0_22, %c71], %27 {strides = array<i32>} : memref<4x326xf32, #tpu.memory_space<vmem>>, vector<4x1xf32>,
    %c0_23 = arith.constant 0 : index
    %c0_24 = arith.constant 0 : index
    %c48 = arith.constant 48 : index
    %30 = vector.load %arg1[%c0_23, %c0_24, %c48] : memref<1x4x256xf32, #tpu.memory_space<vmem>>, vector<1x4x16xf32>
    %31 = vector.shape_cast %30 : vector<1x4x16xf32> to vector<4x16xf32>
    %c0_25 = arith.constant 0 : index
    %c73 = arith.constant 73 : index
    %32 = vector.load %arg5[%c0_25, %c73] : memref<4x326xf32, #tpu.memory_space<vmem>>, vector<4x16xf32>
    tpu.vector_store %arg5[%c0_25, %c73], %31 {strides = array<i32>} : memref<4x326xf32, #tpu.memory_space<vmem>>, vector<4x16xf32>,
    %33 = vector.extract_strided_slice %31 {offsets = [0, 0], sizes = [4, 1], strides = [1, 1]} : vector<4x16xf32> to vector<4x1xf32>
    %34 = vector.extract_strided_slice %31 {offsets = [0, 15], sizes = [4, 1], strides = [1, 1]} : vector<4x16xf32> to vector<4x1xf32>
    %c0_26 = arith.constant 0 : index
    %c72 = arith.constant 72 : index
    %35 = vector.load %arg5[%c0_26, %c72] : memref<4x326xf32, #tpu.memory_space<vmem>>, vector<4x1xf32>
    tpu.vector_store %arg5[%c0_26, %c72], %33 {strides = array<i32>} : memref<4x326xf32, #tpu.memory_space<vmem>>, vector<4x1xf32>,
    %c0_27 = arith.constant 0 : index
    %c89 = arith.constant 89 : index
    %36 = vector.load %arg5[%c0_27, %c89] : memref<4x326xf32, #tpu.memory_space<vmem>>, vector<4x1xf32>
    tpu.vector_store %arg5[%c0_27, %c89], %34 {strides = array<i32>} : memref<4x326xf32, #tpu.memory_space<vmem>>, vector<4x1xf32>,
    %c0_28 = arith.constant 0 : index
    %c0_29 = arith.constant 0 : index
    %c64 = arith.constant 64 : index
    %37 = vector.load %arg1[%c0_28, %c0_29, %c64] : memref<1x4x256xf32, #tpu.memory_space<vmem>>, vector<1x4x16xf32>
    %38 = vector.shape_cast %37 : vector<1x4x16xf32> to vector<4x16xf32>
    %c0_30 = arith.constant 0 : index
    %c91 = arith.constant 91 : index
    %39 = vector.load %arg5[%c0_30, %c91] : memref<4x326xf32, #tpu.memory_space<vmem>>, vector<4x16xf32>
    tpu.vector_store %arg5[%c0_30, %c91], %38 {strides = array<i32>} : memref<4x326xf32, #tpu.memory_space<vmem>>, vector<4x16xf32>,
    %40 = vector.extract_strided_slice %38 {offsets = [0, 0], sizes = [4, 1], strides = [1, 1]} : vector<4x16xf32> to vector<4x1xf32>
    %41 = vector.extract_strided_slice %38 {offsets = [0, 15], sizes = [4, 1], strides = [1, 1]} : vector<4x16xf32> to vector<4x1xf32>
    %c0_31 = arith.constant 0 : index
    %c90 = arith.constant 90 : index
    %42 = vector.load %arg5[%c0_31, %c90] : memref<4x326xf32, #tpu.memory_space<vmem>>, vector<4x1xf32>
    tpu.vector_store %arg5[%c0_31, %c90], %40 {strides = array<i32>} : memref<4x326xf32, #tpu.memory_space<vmem>>, vector<4x1xf32>,
    %c0_32 = arith.constant 0 : index
    %c107 = arith.constant 107 : index
    %43 = vector.load %arg5[%c0_32, %c107] : memref<4x326xf32, #tpu.memory_space<vmem>>, vector<4x1xf32>
    tpu.vector_store %arg5[%c0_32, %c107], %41 {strides = array<i32>} : memref<4x326xf32, #tpu.memory_space<vmem>>, vector<4x1xf32>,
    %c0_33 = arith.constant 0 : index
    %c0_34 = arith.constant 0 : index
    %c80 = arith.constant 80 : index
    %44 = vector.load %arg1[%c0_33, %c0_34, %c80] : memref<1x4x256xf32, #tpu.memory_space<vmem>>, vector<1x4x16xf32>
    %45 = vector.shape_cast %44 : vector<1x4x16xf32> to vector<4x16xf32>
    %c0_35 = arith.constant 0 : index
    %c109 = arith.constant 109 : index
    %46 = vector.load %arg5[%c0_35, %c109] : memref<4x326xf32, #tpu.memory_space<vmem>>, vector<4x16xf32>
    tpu.vector_store %arg5[%c0_35, %c109], %45 {strides = array<i32>} : memref<4x326xf32, #tpu.memory_space<vmem>>, vector<4x16xf32>,
    %47 = vector.extract_strided_slice %45 {offsets = [0, 0], sizes = [4, 1], strides = [1, 1]} : vector<4x16xf32> to vector<4x1xf32>
    %48 = vector.extract_strided_slice %45 {offsets = [0, 15], sizes = [4, 1], strides = [1, 1]} : vector<4x16xf32> to vector<4x1xf32>
    %c0_36 = arith.constant 0 : index
    %c108 = arith.constant 108 : index
    %49 = vector.load %arg5[%c0_36, %c108] : memref<4x326xf32, #tpu.memory_space<vmem>>, vector<4x1xf32>
    tpu.vector_store %arg5[%c0_36, %c108], %47 {strides = array<i32>} : memref<4x326xf32, #tpu.memory_space<vmem>>, vector<4x1xf32>,
    %c0_37 = arith.constant 0 : index
    %c125 = arith.constant 125 : index
    %50 = vector.load %arg5[%c0_37, %c125] : memref<4x326xf32, #tpu.memory_space<vmem>>, vector<4x1xf32>
    tpu.vector_store %arg5[%c0_37, %c125], %48 {strides = array<i32>} : memref<4x326xf32, #tpu.memory_space<vmem>>, vector<4x1xf32>,
    %c0_38 = arith.constant 0 : index
    %c0_39 = arith.constant 0 : index
    %c96 = arith.constant 96 : index
    %51 = vector.load %arg1[%c0_38, %c0_39, %c96] : memref<1x4x256xf32, #tpu.memory_space<vmem>>, vector<1x4x16xf32>
    %52 = vector.shape_cast %51 : vector<1x4x16xf32> to vector<4x16xf32>
    %c0_40 = arith.constant 0 : index
    %c127 = arith.constant 127 : index
    %53 = vector.load %arg5[%c0_40, %c127] : memref<4x326xf32, #tpu.memory_space<vmem>>, vector<4x16xf32>
    tpu.vector_store %arg5[%c0_40, %c127], %52 {strides = array<i32>} : memref<4x326xf32, #tpu.memory_space<vmem>>, vector<4x16xf32>,
    %54 = vector.extract_strided_slice %52 {offsets = [0, 0], sizes = [4, 1], strides = [1, 1]} : vector<4x16xf32> to vector<4x1xf32>
    %55 = vector.extract_strided_slice %52 {offsets = [0, 15], sizes = [4, 1], strides = [1, 1]} : vector<4x16xf32> to vector<4x1xf32>
    %c0_41 = arith.constant 0 : index
    %c126 = arith.constant 126 : index
    %56 = vector.load %arg5[%c0_41, %c126] : memref<4x326xf32, #tpu.memory_space<vmem>>, vector<4x1xf32>
    tpu.vector_store %arg5[%c0_41, %c126], %54 {strides = array<i32>} : memref<4x326xf32, #tpu.memory_space<vmem>>, vector<4x1xf32>,
    %c0_42 = arith.constant 0 : index
    %c143 = arith.constant 143 : index
    %57 = vector.load %arg5[%c0_42, %c143] : memref<4x326xf32, #tpu.memory_space<vmem>>, vector<4x1xf32>
    tpu.vector_store %arg5[%c0_42, %c143], %55 {strides = array<i32>} : memref<4x326xf32, #tpu.memory_space<vmem>>, vector<4x1xf32>,
    %c0_43 = arith.constant 0 : index
    %c0_44 = arith.constant 0 : index
    %c112 = arith.constant 112 : index
    %58 = vector.load %arg1[%c0_43, %c0_44, %c112] : memref<1x4x256xf32, #tpu.memory_space<vmem>>, vector<1x4x16xf32>
    %59 = vector.shape_cast %58 : vector<1x4x16xf32> to vector<4x16xf32>
    %c0_45 = arith.constant 0 : index
    %c145 = arith.constant 145 : index
    %60 = vector.load %arg5[%c0_45, %c145] : memref<4x326xf32, #tpu.memory_space<vmem>>, vector<4x16xf32>
    tpu.vector_store %arg5[%c0_45, %c145], %59 {strides = array<i32>} : memref<4x326xf32, #tpu.memory_space<vmem>>, vector<4x16xf32>,
    %61 = vector.extract_strided_slice %59 {offsets = [0, 0], sizes = [4, 1], strides = [1, 1]} : vector<4x16xf32> to vector<4x1xf32>
    %62 = vector.extract_strided_slice %59 {offsets = [0, 15], sizes = [4, 1], strides = [1, 1]} : vector<4x16xf32> to vector<4x1xf32>
    %c0_46 = arith.constant 0 : index
    %c144 = arith.constant 144 : index
    %63 = vector.load %arg5[%c0_46, %c144] : memref<4x326xf32, #tpu.memory_space<vmem>>, vector<4x1xf32>
    tpu.vector_store %arg5[%c0_46, %c144], %61 {strides = array<i32>} : memref<4x326xf32, #tpu.memory_space<vmem>>, vector<4x1xf32>,
    %c0_47 = arith.constant 0 : index
    %c161 = arith.constant 161 : index
    %64 = vector.load %arg5[%c0_47, %c161] : memref<4x326xf32, #tpu.memory_space<vmem>>, vector<4x1xf32>
    tpu.vector_store %arg5[%c0_47, %c161], %62 {strides = array<i32>} : memref<4x326xf32, #tpu.memory_space<vmem>>, vector<4x1xf32>,
    %c0_48 = arith.constant 0 : index
    %c0_49 = arith.constant 0 : index
    %c128 = arith.constant 128 : index
    %65 = vector.load %arg1[%c0_48, %c0_49, %c128] : memref<1x4x256xf32, #tpu.memory_space<vmem>>, vector<1x4x16xf32>
    %66 = vector.shape_cast %65 : vector<1x4x16xf32> to vector<4x16xf32>
    %c0_50 = arith.constant 0 : index
    %c163 = arith.constant 163 : index
    %67 = vector.load %arg5[%c0_50, %c163] : memref<4x326xf32, #tpu.memory_space<vmem>>, vector<4x16xf32>
    tpu.vector_store %arg5[%c0_50, %c163], %66 {strides = array<i32>} : memref<4x326xf32, #tpu.memory_space<vmem>>, vector<4x16xf32>,
    %68 = vector.extract_strided_slice %66 {offsets = [0, 0], sizes = [4, 1], strides = [1, 1]} : vector<4x16xf32> to vector<4x1xf32>
    %69 = vector.extract_strided_slice %66 {offsets = [0, 15], sizes = [4, 1], strides = [1, 1]} : vector<4x16xf32> to vector<4x1xf32>
    %c0_51 = arith.constant 0 : index
    %c162 = arith.constant 162 : index
    %70 = vector.load %arg5[%c0_51, %c162] : memref<4x326xf32, #tpu.memory_space<vmem>>, vector<4x1xf32>
    tpu.vector_store %arg5[%c0_51, %c162], %68 {strides = array<i32>} : memref<4x326xf32, #tpu.memory_space<vmem>>, vector<4x1xf32>,
    %c0_52 = arith.constant 0 : index
    %c179 = arith.constant 179 : index
    %71 = vector.load %arg5[%c0_52, %c179] : memref<4x326xf32, #tpu.memory_space<vmem>>, vector<4x1xf32>
    tpu.vector_store %arg5[%c0_52, %c179], %69 {strides = array<i32>} : memref<4x326xf32, #tpu.memory_space<vmem>>, vector<4x1xf32>,
    %c0_53 = arith.constant 0 : index
    %c0_54 = arith.constant 0 : index
    %c144_55 = arith.constant 144 : index
    %72 = vector.load %arg1[%c0_53, %c0_54, %c144_55] : memref<1x4x256xf32, #tpu.memory_space<vmem>>, vector<1x4x16xf32>
    %73 = vector.shape_cast %72 : vector<1x4x16xf32> to vector<4x16xf32>
    %c0_56 = arith.constant 0 : index
    %c181 = arith.constant 181 : index
    %74 = vector.load %arg5[%c0_56, %c181] : memref<4x326xf32, #tpu.memory_space<vmem>>, vector<4x16xf32>
    tpu.vector_store %arg5[%c0_56, %c181], %73 {strides = array<i32>} : memref<4x326xf32, #tpu.memory_space<vmem>>, vector<4x16xf32>,
    %75 = vector.extract_strided_slice %73 {offsets = [0, 0], sizes = [4, 1], strides = [1, 1]} : vector<4x16xf32> to vector<4x1xf32>
    %76 = vector.extract_strided_slice %73 {offsets = [0, 15], sizes = [4, 1], strides = [1, 1]} : vector<4x16xf32> to vector<4x1xf32>
    %c0_57 = arith.constant 0 : index
    %c180 = arith.constant 180 : index
    %77 = vector.load %arg5[%c0_57, %c180] : memref<4x326xf32, #tpu.memory_space<vmem>>, vector<4x1xf32>
    tpu.vector_store %arg5[%c0_57, %c180], %75 {strides = array<i32>} : memref<4x326xf32, #tpu.memory_space<vmem>>, vector<4x1xf32>,
    %c0_58 = arith.constant 0 : index
    %c197 = arith.constant 197 : index
    %78 = vector.load %arg5[%c0_58, %c197] : memref<4x326xf32, #tpu.memory_space<vmem>>, vector<4x1xf32>
    tpu.vector_store %arg5[%c0_58, %c197], %76 {strides = array<i32>} : memref<4x326xf32, #tpu.memory_space<vmem>>, vector<4x1xf32>,
    %c0_59 = arith.constant 0 : index
    %c0_60 = arith.constant 0 : index
    %c160 = arith.constant 160 : index
    %79 = vector.load %arg1[%c0_59, %c0_60, %c160] : memref<1x4x256xf32, #tpu.memory_space<vmem>>, vector<1x4x16xf32>
    %80 = vector.shape_cast %79 : vector<1x4x16xf32> to vector<4x16xf32>
    %c0_61 = arith.constant 0 : index
    %c199 = arith.constant 199 : index
    %81 = vector.load %arg5[%c0_61, %c199] : memref<4x326xf32, #tpu.memory_space<vmem>>, vector<4x16xf32>
    tpu.vector_store %arg5[%c0_61, %c199], %80 {strides = array<i32>} : memref<4x326xf32, #tpu.memory_space<vmem>>, vector<4x16xf32>,
    %82 = vector.extract_strided_slice %80 {offsets = [0, 0], sizes = [4, 1], strides = [1, 1]} : vector<4x16xf32> to vector<4x1xf32>
    %83 = vector.extract_strided_slice %80 {offsets = [0, 15], sizes = [4, 1], strides = [1, 1]} : vector<4x16xf32> to vector<4x1xf32>
    %c0_62 = arith.constant 0 : index
    %c198 = arith.constant 198 : index
    %84 = vector.load %arg5[%c0_62, %c198] : memref<4x326xf32, #tpu.memory_space<vmem>>, vector<4x1xf32>
    tpu.vector_store %arg5[%c0_62, %c198], %82 {strides = array<i32>} : memref<4x326xf32, #tpu.memory_space<vmem>>, vector<4x1xf32>,
    %c0_63 = arith.constant 0 : index
    %c215 = arith.constant 215 : index
    %85 = vector.load %arg5[%c0_63, %c215] : memref<4x326xf32, #tpu.memory_space<vmem>>, vector<4x1xf32>
    tpu.vector_store %arg5[%c0_63, %c215], %83 {strides = array<i32>} : memref<4x326xf32, #tpu.memory_space<vmem>>, vector<4x1xf32>,
    %c0_64 = arith.constant 0 : index
    %c0_65 = arith.constant 0 : index
    %c176 = arith.constant 176 : index
    %86 = vector.load %arg1[%c0_64, %c0_65, %c176] : memref<1x4x256xf32, #tpu.memory_space<vmem>>, vector<1x4x16xf32>
    %87 = vector.shape_cast %86 : vector<1x4x16xf32> to vector<4x16xf32>
    %c0_66 = arith.constant 0 : index
    %c217 = arith.constant 217 : index
    %88 = vector.load %arg5[%c0_66, %c217] : memref<4x326xf32, #tpu.memory_space<vmem>>, vector<4x16xf32>
    tpu.vector_store %arg5[%c0_66, %c217], %87 {strides = array<i32>} : memref<4x326xf32, #tpu.memory_space<vmem>>, vector<4x16xf32>,
    %89 = vector.extract_strided_slice %87 {offsets = [0, 0], sizes = [4, 1], strides = [1, 1]} : vector<4x16xf32> to vector<4x1xf32>
    %90 = vector.extract_strided_slice %87 {offsets = [0, 15], sizes = [4, 1], strides = [1, 1]} : vector<4x16xf32> to vector<4x1xf32>
    %c0_67 = arith.constant 0 : index
    %c216 = arith.constant 216 : index
    %91 = vector.load %arg5[%c0_67, %c216] : memref<4x326xf32, #tpu.memory_space<vmem>>, vector<4x1xf32>
    tpu.vector_store %arg5[%c0_67, %c216], %89 {strides = array<i32>} : memref<4x326xf32, #tpu.memory_space<vmem>>, vector<4x1xf32>,
    %c0_68 = arith.constant 0 : index
    %c233 = arith.constant 233 : index
    %92 = vector.load %arg5[%c0_68, %c233] : memref<4x326xf32, #tpu.memory_space<vmem>>, vector<4x1xf32>
    tpu.vector_store %arg5[%c0_68, %c233], %90 {strides = array<i32>} : memref<4x326xf32, #tpu.memory_space<vmem>>, vector<4x1xf32>,
    %c0_69 = arith.constant 0 : index
    %c0_70 = arith.constant 0 : index
    %c192 = arith.constant 192 : index
    %93 = vector.load %arg1[%c0_69, %c0_70, %c192] : memref<1x4x256xf32, #tpu.memory_space<vmem>>, vector<1x4x16xf32>
    %94 = vector.shape_cast %93 : vector<1x4x16xf32> to vector<4x16xf32>
    %c0_71 = arith.constant 0 : index
    %c235 = arith.constant 235 : index
    %95 = vector.load %arg5[%c0_71, %c235] : memref<4x326xf32, #tpu.memory_space<vmem>>, vector<4x16xf32>
    tpu.vector_store %arg5[%c0_71, %c235], %94 {strides = array<i32>} : memref<4x326xf32, #tpu.memory_space<vmem>>, vector<4x16xf32>,
    %96 = vector.extract_strided_slice %94 {offsets = [0, 0], sizes = [4, 1], strides = [1, 1]} : vector<4x16xf32> to vector<4x1xf32>
    %97 = vector.extract_strided_slice %94 {offsets = [0, 15], sizes = [4, 1], strides = [1, 1]} : vector<4x16xf32> to vector<4x1xf32>
    %c0_72 = arith.constant 0 : index
    %c234 = arith.constant 234 : index
    %98 = vector.load %arg5[%c0_72, %c234] : memref<4x326xf32, #tpu.memory_space<vmem>>, vector<4x1xf32>
    tpu.vector_store %arg5[%c0_72, %c234], %96 {strides = array<i32>} : memref<4x326xf32, #tpu.memory_space<vmem>>, vector<4x1xf32>,
    %c0_73 = arith.constant 0 : index
    %c251 = arith.constant 251 : index
    %99 = vector.load %arg5[%c0_73, %c251] : memref<4x326xf32, #tpu.memory_space<vmem>>, vector<4x1xf32>
    tpu.vector_store %arg5[%c0_73, %c251], %97 {strides = array<i32>} : memref<4x326xf32, #tpu.memory_space<vmem>>, vector<4x1xf32>,
    %c0_74 = arith.constant 0 : index
    %c0_75 = arith.constant 0 : index
    %c208 = arith.constant 208 : index
    %100 = vector.load %arg1[%c0_74, %c0_75, %c208] : memref<1x4x256xf32, #tpu.memory_space<vmem>>, vector<1x4x16xf32>
    %101 = vector.shape_cast %100 : vector<1x4x16xf32> to vector<4x16xf32>
    %c0_76 = arith.constant 0 : index
    %c253 = arith.constant 253 : index
    %102 = vector.load %arg5[%c0_76, %c253] : memref<4x326xf32, #tpu.memory_space<vmem>>, vector<4x16xf32>
    tpu.vector_store %arg5[%c0_76, %c253], %101 {strides = array<i32>} : memref<4x326xf32, #tpu.memory_space<vmem>>, vector<4x16xf32>,
    %103 = vector.extract_strided_slice %101 {offsets = [0, 0], sizes = [4, 1], strides = [1, 1]} : vector<4x16xf32> to vector<4x1xf32>
    %104 = vector.extract_strided_slice %101 {offsets = [0, 15], sizes = [4, 1], strides = [1, 1]} : vector<4x16xf32> to vector<4x1xf32>
    %c0_77 = arith.constant 0 : index
    %c252 = arith.constant 252 : index
    %105 = vector.load %arg5[%c0_77, %c252] : memref<4x326xf32, #tpu.memory_space<vmem>>, vector<4x1xf32>
    tpu.vector_store %arg5[%c0_77, %c252], %103 {strides = array<i32>} : memref<4x326xf32, #tpu.memory_space<vmem>>, vector<4x1xf32>,
    %c0_78 = arith.constant 0 : index
    %c269 = arith.constant 269 : index
    %106 = vector.load %arg5[%c0_78, %c269] : memref<4x326xf32, #tpu.memory_space<vmem>>, vector<4x1xf32>
    tpu.vector_store %arg5[%c0_78, %c269], %104 {strides = array<i32>} : memref<4x326xf32, #tpu.memory_space<vmem>>, vector<4x1xf32>,
    %c0_79 = arith.constant 0 : index
    %c0_80 = arith.constant 0 : index
    %c224 = arith.constant 224 : index
    %107 = vector.load %arg1[%c0_79, %c0_80, %c224] : memref<1x4x256xf32, #tpu.memory_space<vmem>>, vector<1x4x16xf32>
    %108 = vector.shape_cast %107 : vector<1x4x16xf32> to vector<4x16xf32>
    %c0_81 = arith.constant 0 : index
    %c271 = arith.constant 271 : index
    %109 = vector.load %arg5[%c0_81, %c271] : memref<4x326xf32, #tpu.memory_space<vmem>>, vector<4x16xf32>
    tpu.vector_store %arg5[%c0_81, %c271], %108 {strides = array<i32>} : memref<4x326xf32, #tpu.memory_space<vmem>>, vector<4x16xf32>,
    %110 = vector.extract_strided_slice %108 {offsets = [0, 0], sizes = [4, 1], strides = [1, 1]} : vector<4x16xf32> to vector<4x1xf32>
    %111 = vector.extract_strided_slice %108 {offsets = [0, 15], sizes = [4, 1], strides = [1, 1]} : vector<4x16xf32> to vector<4x1xf32>
    %c0_82 = arith.constant 0 : index
    %c270 = arith.constant 270 : index
    %112 = vector.load %arg5[%c0_82, %c270] : memref<4x326xf32, #tpu.memory_space<vmem>>, vector<4x1xf32>
    tpu.vector_store %arg5[%c0_82, %c270], %110 {strides = array<i32>} : memref<4x326xf32, #tpu.memory_space<vmem>>, vector<4x1xf32>,
    %c0_83 = arith.constant 0 : index
    %c287 = arith.constant 287 : index
    %113 = vector.load %arg5[%c0_83, %c287] : memref<4x326xf32, #tpu.memory_space<vmem>>, vector<4x1xf32>
    tpu.vector_store %arg5[%c0_83, %c287], %111 {strides = array<i32>} : memref<4x326xf32, #tpu.memory_space<vmem>>, vector<4x1xf32>,
    %c0_84 = arith.constant 0 : index
    %c0_85 = arith.constant 0 : index
    %c240 = arith.constant 240 : index
    %114 = vector.load %arg1[%c0_84, %c0_85, %c240] : memref<1x4x256xf32, #tpu.memory_space<vmem>>, vector<1x4x16xf32>
    %115 = vector.shape_cast %114 : vector<1x4x16xf32> to vector<4x16xf32>
    %c0_86 = arith.constant 0 : index
    %c289 = arith.constant 289 : index
    %116 = vector.load %arg5[%c0_86, %c289] : memref<4x326xf32, #tpu.memory_space<vmem>>, vector<4x16xf32>
    tpu.vector_store %arg5[%c0_86, %c289], %115 {strides = array<i32>} : memref<4x326xf32, #tpu.memory_space<vmem>>, vector<4x16xf32>,
    %117 = vector.extract_strided_slice %115 {offsets = [0, 0], sizes = [4, 1], strides = [1, 1]} : vector<4x16xf32> to vector<4x1xf32>
    %118 = vector.extract_strided_slice %115 {offsets = [0, 15], sizes = [4, 1], strides = [1, 1]} : vector<4x16xf32> to vector<4x1xf32>
    %c0_87 = arith.constant 0 : index
    %c288 = arith.constant 288 : index
    %119 = vector.load %arg5[%c0_87, %c288] : memref<4x326xf32, #tpu.memory_space<vmem>>, vector<4x1xf32>
    tpu.vector_store %arg5[%c0_87, %c288], %117 {strides = array<i32>} : memref<4x326xf32, #tpu.memory_space<vmem>>, vector<4x1xf32>,
    %c0_88 = arith.constant 0 : index
    %c305 = arith.constant 305 : index
    %120 = vector.load %arg5[%c0_88, %c305] : memref<4x326xf32, #tpu.memory_space<vmem>>, vector<4x1xf32>
    tpu.vector_store %arg5[%c0_88, %c305], %118 {strides = array<i32>} : memref<4x326xf32, #tpu.memory_space<vmem>>, vector<4x1xf32>,
    %c0_89 = arith.constant 0 : index
    %c0_90 = arith.constant 0 : index
    %c240_91 = arith.constant 240 : index
    %121 = vector.load %arg1[%c0_89, %c0_90, %c240_91] : memref<1x4x256xf32, #tpu.memory_space<vmem>>, vector<1x4x16xf32>
    %122 = vector.shape_cast %121 : vector<1x4x16xf32> to vector<4x16xf32>
    %c0_92 = arith.constant 0 : index
    %c307 = arith.constant 307 : index
    %123 = vector.load %arg5[%c0_92, %c307] : memref<4x326xf32, #tpu.memory_space<vmem>>, vector<4x16xf32>
    tpu.vector_store %arg5[%c0_92, %c307], %122 {strides = array<i32>} : memref<4x326xf32, #tpu.memory_space<vmem>>, vector<4x16xf32>,
    %124 = vector.extract_strided_slice %122 {offsets = [0, 0], sizes = [4, 1], strides = [1, 1]} : vector<4x16xf32> to vector<4x1xf32>
    %125 = vector.extract_strided_slice %122 {offsets = [0, 15], sizes = [4, 1], strides = [1, 1]} : vector<4x16xf32> to vector<4x1xf32>
    %c0_93 = arith.constant 0 : index
    %c306 = arith.constant 306 : index
    %126 = vector.load %arg5[%c0_93, %c306] : memref<4x326xf32, #tpu.memory_space<vmem>>, vector<4x1xf32>
    tpu.vector_store %arg5[%c0_93, %c306], %124 {strides = array<i32>} : memref<4x326xf32, #tpu.memory_space<vmem>>, vector<4x1xf32>,
    %c0_94 = arith.constant 0 : index
    %c323 = arith.constant 323 : index
    %127 = vector.load %arg5[%c0_94, %c323] : memref<4x326xf32, #tpu.memory_space<vmem>>, vector<4x1xf32>
    tpu.vector_store %arg5[%c0_94, %c323], %125 {strides = array<i32>} : memref<4x326xf32, #tpu.memory_space<vmem>>, vector<4x1xf32>,
    %c0_95 = arith.constant 0 : index
    %c0_96 = arith.constant 0 : index
    %128 = vector.load %arg5[%c0_95, %c0_96] : memref<4x326xf32, #tpu.memory_space<vmem>>, vector<4x288xf32>
    %c0_97 = arith.constant 0 : index
    %c0_98 = arith.constant 0 : index
    %129 = vector.load %arg6[%c0_97, %c0_98] : memref<36x288xf32, #tpu.memory_space<vmem>>, vector<4x288xf32>
    tpu.vector_store %arg6[%c0_97, %c0_98], %128 {strides = array<i32>} : memref<36x288xf32, #tpu.memory_space<vmem>>, vector<4x288xf32>,
    %c0_99 = arith.constant 0 : index
    %c1_100 = arith.constant 1 : index
    %130 = vector.load %arg5[%c0_99, %c1_100] : memref<4x326xf32, #tpu.memory_space<vmem>>, vector<4x288xf32>
    %c4 = arith.constant 4 : index
    %c0_101 = arith.constant 0 : index
    %131 = vector.load %arg6[%c4, %c0_101] : memref<36x288xf32, #tpu.memory_space<vmem>>, vector<4x288xf32>
    tpu.vector_store %arg6[%c4, %c0_101], %130 {strides = array<i32>} : memref<36x288xf32, #tpu.memory_space<vmem>>, vector<4x288xf32>,
    %c0_102 = arith.constant 0 : index
    %c2 = arith.constant 2 : index
    %132 = vector.load %arg5[%c0_102, %c2] : memref<4x326xf32, #tpu.memory_space<vmem>>, vector<4x288xf32>
    %c8 = arith.constant 8 : index
    %c0_103 = arith.constant 0 : index
    %133 = vector.load %arg6[%c8, %c0_103] : memref<36x288xf32, #tpu.memory_space<vmem>>, vector<4x288xf32>
    tpu.vector_store %arg6[%c8, %c0_103], %132 {strides = array<i32>} : memref<36x288xf32, #tpu.memory_space<vmem>>, vector<4x288xf32>,
    %c0_104 = arith.constant 0 : index
    %c18_105 = arith.constant 18 : index
    %134 = vector.load %arg5[%c0_104, %c18_105] : memref<4x326xf32, #tpu.memory_space<vmem>>, vector<4x288xf32>
    %c12 = arith.constant 12 : index
    %c0_106 = arith.constant 0 : index
    %135 = vector.load %arg6[%c12, %c0_106] : memref<36x288xf32, #tpu.memory_space<vmem>>, vector<4x288xf32>
    tpu.vector_store %arg6[%c12, %c0_106], %134 {strides = array<i32>} : memref<36x288xf32, #tpu.memory_space<vmem>>, vector<4x288xf32>,
    %c0_107 = arith.constant 0 : index
    %c19_108 = arith.constant 19 : index
    %136 = vector.load %arg5[%c0_107, %c19_108] : memref<4x326xf32, #tpu.memory_space<vmem>>, vector<4x288xf32>
    %c16_109 = arith.constant 16 : index
    %c0_110 = arith.constant 0 : index
    %137 = vector.load %arg6[%c16_109, %c0_110] : memref<36x288xf32, #tpu.memory_space<vmem>>, vector<4x288xf32>
    tpu.vector_store %arg6[%c16_109, %c0_110], %136 {strides = array<i32>} : memref<36x288xf32, #tpu.memory_space<vmem>>, vector<4x288xf32>,
    %c0_111 = arith.constant 0 : index
    %c20 = arith.constant 20 : index
    %138 = vector.load %arg5[%c0_111, %c20] : memref<4x326xf32, #tpu.memory_space<vmem>>, vector<4x288xf32>
    %c20_112 = arith.constant 20 : index
    %c0_113 = arith.constant 0 : index
    %139 = vector.load %arg6[%c20_112, %c0_113] : memref<36x288xf32, #tpu.memory_space<vmem>>, vector<4x288xf32>
    tpu.vector_store %arg6[%c20_112, %c0_113], %138 {strides = array<i32>} : memref<36x288xf32, #tpu.memory_space<vmem>>, vector<4x288xf32>,
    %c0_114 = arith.constant 0 : index
    %c36_115 = arith.constant 36 : index
    %140 = vector.load %arg5[%c0_114, %c36_115] : memref<4x326xf32, #tpu.memory_space<vmem>>, vector<4x288xf32>
    %c24 = arith.constant 24 : index
    %c0_116 = arith.constant 0 : index
    %141 = vector.load %arg6[%c24, %c0_116] : memref<36x288xf32, #tpu.memory_space<vmem>>, vector<4x288xf32>
    tpu.vector_store %arg6[%c24, %c0_116], %140 {strides = array<i32>} : memref<36x288xf32, #tpu.memory_space<vmem>>, vector<4x288xf32>,
    %c0_117 = arith.constant 0 : index
    %c37_118 = arith.constant 37 : index
    %142 = vector.load %arg5[%c0_117, %c37_118] : memref<4x326xf32, #tpu.memory_space<vmem>>, vector<4x288xf32>
    %c28 = arith.constant 28 : index
    %c0_119 = arith.constant 0 : index
    %143 = vector.load %arg6[%c28, %c0_119] : memref<36x288xf32, #tpu.memory_space<vmem>>, vector<4x288xf32>
    tpu.vector_store %arg6[%c28, %c0_119], %142 {strides = array<i32>} : memref<36x288xf32, #tpu.memory_space<vmem>>, vector<4x288xf32>,
    %c0_120 = arith.constant 0 : index
    %c38 = arith.constant 38 : index
    %144 = vector.load %arg5[%c0_120, %c38] : memref<4x326xf32, #tpu.memory_space<vmem>>, vector<4x288xf32>
    %c32_121 = arith.constant 32 : index
    %c0_122 = arith.constant 0 : index
    %145 = vector.load %arg6[%c32_121, %c0_122] : memref<36x288xf32, #tpu.memory_space<vmem>>, vector<4x288xf32>
    tpu.vector_store %arg6[%c32_121, %c0_122], %144 {strides = array<i32>} : memref<36x288xf32, #tpu.memory_space<vmem>>, vector<4x288xf32>,
    %c0_123 = arith.constant 0 : index
    %c0_124 = arith.constant 0 : index
    %146 = vector.load %arg2[%c0_123, %c0_124] : memref<8x36xf32, #tpu.memory_space<vmem>>, vector<8x36xf32>
    %c0_125 = arith.constant 0 : index
    %c0_126 = arith.constant 0 : index
    %147 = vector.load %arg6[%c0_125, %c0_126] : memref<36x288xf32, #tpu.memory_space<vmem>>, vector<36x288xf32>
    %cst_127 = arith.constant dense<0.000000e+00> : vector<8x288xf32>
    %148 = tpu.matmul %146, %147, %cst_127 {dimension_numbers = #tpu.dot_dimension_numbers<[1], [0], [0], [1], [0, 0, 1, 1], [], []>} : vector<8x36xf32>, vector<36x288xf32>, vector<8x288xf32> -> vector<8x288xf32>
    %c0_128 = arith.constant 0 : index
    %c0_129 = arith.constant 0 : index
    %149 = vector.load %arg3[%c0_128, %c0_129] : memref<8x1xf32, #tpu.memory_space<vmem>>, vector<8x1xf32>
    %150 = vector.broadcast %149 : vector<8x1xf32> to vector<8x288xf32>
    %151 = arith.addf %148, %150 : vector<8x288xf32>
    %cst_130 = arith.constant 2.000000e-02 : f32
    %152 = vector.broadcast %cst_130 : f32 to vector<8x288xf32>
    %153 = arith.mulf %152, %151 : vector<8x288xf32>
    %154 = arith.maximumf %151, %153 : vector<8x288xf32>
    %155 = vector.extract_strided_slice %154 {offsets = [0, 0], sizes = [8, 16], strides = [1, 1]} : vector<8x288xf32> to vector<8x16xf32>
    %c0_131 = arith.constant 0 : index
    %c0_132 = arith.constant 0 : index
    %c0_133 = arith.constant 0 : index
    %156 = vector.load %arg4[%c0_131, %c0_132, %c0_133] : memref<1x8x256xf32, #tpu.memory_space<vmem>>, vector<1x8x16xf32>
    %157 = vector.shape_cast %156 : vector<1x8x16xf32> to vector<8x16xf32>
    %158 = vector.shape_cast %155 : vector<8x16xf32> to vector<1x8x16xf32>
    tpu.vector_store %arg4[%c0_131, %c0_132, %c0_133], %158 {strides = array<i32>} : memref<1x8x256xf32, #tpu.memory_space<vmem>>, vector<1x8x16xf32>,
    %159 = vector.extract_strided_slice %154 {offsets = [0, 18], sizes = [8, 16], strides = [1, 1]} : vector<8x288xf32> to vector<8x16xf32>
    %c0_134 = arith.constant 0 : index
    %c0_135 = arith.constant 0 : index
    %c16_136 = arith.constant 16 : index
    %160 = vector.load %arg4[%c0_134, %c0_135, %c16_136] : memref<1x8x256xf32, #tpu.memory_space<vmem>>, vector<1x8x16xf32>
    %161 = vector.shape_cast %160 : vector<1x8x16xf32> to vector<8x16xf32>
    %162 = vector.shape_cast %159 : vector<8x16xf32> to vector<1x8x16xf32>
    tpu.vector_store %arg4[%c0_134, %c0_135, %c16_136], %162 {strides = array<i32>} : memref<1x8x256xf32, #tpu.memory_space<vmem>>, vector<1x8x16xf32>,
    %163 = vector.extract_strided_slice %154 {offsets = [0, 36], sizes = [8, 16], strides = [1, 1]} : vector<8x288xf32> to vector<8x16xf32>
    %c0_137 = arith.constant 0 : index
    %c0_138 = arith.constant 0 : index
    %c32_139 = arith.constant 32 : index
    %164 = vector.load %arg4[%c0_137, %c0_138, %c32_139] : memref<1x8x256xf32, #tpu.memory_space<vmem>>, vector<1x8x16xf32>
    %165 = vector.shape_cast %164 : vector<1x8x16xf32> to vector<8x16xf32>
    %166 = vector.shape_cast %163 : vector<8x16xf32> to vector<1x8x16xf32>
    tpu.vector_store %arg4[%c0_137, %c0_138, %c32_139], %166 {strides = array<i32>} : memref<1x8x256xf32, #tpu.memory_space<vmem>>, vector<1x8x16xf32>,
    %167 = vector.extract_strided_slice %154 {offsets = [0, 54], sizes = [8, 16], strides = [1, 1]} : vector<8x288xf32> to vector<8x16xf32>
    %c0_140 = arith.constant 0 : index
    %c0_141 = arith.constant 0 : index
    %c48_142 = arith.constant 48 : index
    %168 = vector.load %arg4[%c0_140, %c0_141, %c48_142] : memref<1x8x256xf32, #tpu.memory_space<vmem>>, vector<1x8x16xf32>
    %169 = vector.shape_cast %168 : vector<1x8x16xf32> to vector<8x16xf32>
    %170 = vector.shape_cast %167 : vector<8x16xf32> to vector<1x8x16xf32>
    tpu.vector_store %arg4[%c0_140, %c0_141, %c48_142], %170 {strides = array<i32>} : memref<1x8x256xf32, #tpu.memory_space<vmem>>, vector<1x8x16xf32>,
    %171 = vector.extract_strided_slice %154 {offsets = [0, 72], sizes = [8, 16], strides = [1, 1]} : vector<8x288xf32> to vector<8x16xf32>
    %c0_143 = arith.constant 0 : index
    %c0_144 = arith.constant 0 : index
    %c64_145 = arith.constant 64 : index
    %172 = vector.load %arg4[%c0_143, %c0_144, %c64_145] : memref<1x8x256xf32, #tpu.memory_space<vmem>>, vector<1x8x16xf32>
    %173 = vector.shape_cast %172 : vector<1x8x16xf32> to vector<8x16xf32>
    %174 = vector.shape_cast %171 : vector<8x16xf32> to vector<1x8x16xf32>
    tpu.vector_store %arg4[%c0_143, %c0_144, %c64_145], %174 {strides = array<i32>} : memref<1x8x256xf32, #tpu.memory_space<vmem>>, vector<1x8x16xf32>,
    %175 = vector.extract_strided_slice %154 {offsets = [0, 90], sizes = [8, 16], strides = [1, 1]} : vector<8x288xf32> to vector<8x16xf32>
    %c0_146 = arith.constant 0 : index
    %c0_147 = arith.constant 0 : index
    %c80_148 = arith.constant 80 : index
    %176 = vector.load %arg4[%c0_146, %c0_147, %c80_148] : memref<1x8x256xf32, #tpu.memory_space<vmem>>, vector<1x8x16xf32>
    %177 = vector.shape_cast %176 : vector<1x8x16xf32> to vector<8x16xf32>
    %178 = vector.shape_cast %175 : vector<8x16xf32> to vector<1x8x16xf32>
    tpu.vector_store %arg4[%c0_146, %c0_147, %c80_148], %178 {strides = array<i32>} : memref<1x8x256xf32, #tpu.memory_space<vmem>>, vector<1x8x16xf32>,
    %179 = vector.extract_strided_slice %154 {offsets = [0, 108], sizes = [8, 16], strides = [1, 1]} : vector<8x288xf32> to vector<8x16xf32>
    %c0_149 = arith.constant 0 : index
    %c0_150 = arith.constant 0 : index
    %c96_151 = arith.constant 96 : index
    %180 = vector.load %arg4[%c0_149, %c0_150, %c96_151] : memref<1x8x256xf32, #tpu.memory_space<vmem>>, vector<1x8x16xf32>
    %181 = vector.shape_cast %180 : vector<1x8x16xf32> to vector<8x16xf32>
    %182 = vector.shape_cast %179 : vector<8x16xf32> to vector<1x8x16xf32>
    tpu.vector_store %arg4[%c0_149, %c0_150, %c96_151], %182 {strides = array<i32>} : memref<1x8x256xf32, #tpu.memory_space<vmem>>, vector<1x8x16xf32>,
    %183 = vector.extract_strided_slice %154 {offsets = [0, 126], sizes = [8, 16], strides = [1, 1]} : vector<8x288xf32> to vector<8x16xf32>
    %c0_152 = arith.constant 0 : index
    %c0_153 = arith.constant 0 : index
    %c112_154 = arith.constant 112 : index
    %184 = vector.load %arg4[%c0_152, %c0_153, %c112_154] : memref<1x8x256xf32, #tpu.memory_space<vmem>>, vector<1x8x16xf32>
    %185 = vector.shape_cast %184 : vector<1x8x16xf32> to vector<8x16xf32>
    %186 = vector.shape_cast %183 : vector<8x16xf32> to vector<1x8x16xf32>
    tpu.vector_store %arg4[%c0_152, %c0_153, %c112_154], %186 {strides = array<i32>} : memref<1x8x256xf32, #tpu.memory_space<vmem>>, vector<1x8x16xf32>,
    %187 = vector.extract_strided_slice %154 {offsets = [0, 144], sizes = [8, 16], strides = [1, 1]} : vector<8x288xf32> to vector<8x16xf32>
    %c0_155 = arith.constant 0 : index
    %c0_156 = arith.constant 0 : index
    %c128_157 = arith.constant 128 : index
    %188 = vector.load %arg4[%c0_155, %c0_156, %c128_157] : memref<1x8x256xf32, #tpu.memory_space<vmem>>, vector<1x8x16xf32>
    %189 = vector.shape_cast %188 : vector<1x8x16xf32> to vector<8x16xf32>
    %190 = vector.shape_cast %187 : vector<8x16xf32> to vector<1x8x16xf32>
    tpu.vector_store %arg4[%c0_155, %c0_156, %c128_157], %190 {strides = array<i32>} : memref<1x8x256xf32, #tpu.memory_space<vmem>>, vector<1x8x16xf32>,
    %191 = vector.extract_strided_slice %154 {offsets = [0, 162], sizes = [8, 16], strides = [1, 1]} : vector<8x288xf32> to vector<8x16xf32>
    %c0_158 = arith.constant 0 : index
    %c0_159 = arith.constant 0 : index
    %c144_160 = arith.constant 144 : index
    %192 = vector.load %arg4[%c0_158, %c0_159, %c144_160] : memref<1x8x256xf32, #tpu.memory_space<vmem>>, vector<1x8x16xf32>
    %193 = vector.shape_cast %192 : vector<1x8x16xf32> to vector<8x16xf32>
    %194 = vector.shape_cast %191 : vector<8x16xf32> to vector<1x8x16xf32>
    tpu.vector_store %arg4[%c0_158, %c0_159, %c144_160], %194 {strides = array<i32>} : memref<1x8x256xf32, #tpu.memory_space<vmem>>, vector<1x8x16xf32>,
    %195 = vector.extract_strided_slice %154 {offsets = [0, 180], sizes = [8, 16], strides = [1, 1]} : vector<8x288xf32> to vector<8x16xf32>
    %c0_161 = arith.constant 0 : index
    %c0_162 = arith.constant 0 : index
    %c160_163 = arith.constant 160 : index
    %196 = vector.load %arg4[%c0_161, %c0_162, %c160_163] : memref<1x8x256xf32, #tpu.memory_space<vmem>>, vector<1x8x16xf32>
    %197 = vector.shape_cast %196 : vector<1x8x16xf32> to vector<8x16xf32>
    %198 = vector.shape_cast %195 : vector<8x16xf32> to vector<1x8x16xf32>
    tpu.vector_store %arg4[%c0_161, %c0_162, %c160_163], %198 {strides = array<i32>} : memref<1x8x256xf32, #tpu.memory_space<vmem>>, vector<1x8x16xf32>,
    %199 = vector.extract_strided_slice %154 {offsets = [0, 198], sizes = [8, 16], strides = [1, 1]} : vector<8x288xf32> to vector<8x16xf32>
    %c0_164 = arith.constant 0 : index
    %c0_165 = arith.constant 0 : index
    %c176_166 = arith.constant 176 : index
    %200 = vector.load %arg4[%c0_164, %c0_165, %c176_166] : memref<1x8x256xf32, #tpu.memory_space<vmem>>, vector<1x8x16xf32>
    %201 = vector.shape_cast %200 : vector<1x8x16xf32> to vector<8x16xf32>
    %202 = vector.shape_cast %199 : vector<8x16xf32> to vector<1x8x16xf32>
    tpu.vector_store %arg4[%c0_164, %c0_165, %c176_166], %202 {strides = array<i32>} : memref<1x8x256xf32, #tpu.memory_space<vmem>>, vector<1x8x16xf32>,
    %203 = vector.extract_strided_slice %154 {offsets = [0, 216], sizes = [8, 16], strides = [1, 1]} : vector<8x288xf32> to vector<8x16xf32>
    %c0_167 = arith.constant 0 : index
    %c0_168 = arith.constant 0 : index
    %c192_169 = arith.constant 192 : index
    %204 = vector.load %arg4[%c0_167, %c0_168, %c192_169] : memref<1x8x256xf32, #tpu.memory_space<vmem>>, vector<1x8x16xf32>
    %205 = vector.shape_cast %204 : vector<1x8x16xf32> to vector<8x16xf32>
    %206 = vector.shape_cast %203 : vector<8x16xf32> to vector<1x8x16xf32>
    tpu.vector_store %arg4[%c0_167, %c0_168, %c192_169], %206 {strides = array<i32>} : memref<1x8x256xf32, #tpu.memory_space<vmem>>, vector<1x8x16xf32>,
    %207 = vector.extract_strided_slice %154 {offsets = [0, 234], sizes = [8, 16], strides = [1, 1]} : vector<8x288xf32> to vector<8x16xf32>
    %c0_170 = arith.constant 0 : index
    %c0_171 = arith.constant 0 : index
    %c208_172 = arith.constant 208 : index
    %208 = vector.load %arg4[%c0_170, %c0_171, %c208_172] : memref<1x8x256xf32, #tpu.memory_space<vmem>>, vector<1x8x16xf32>
    %209 = vector.shape_cast %208 : vector<1x8x16xf32> to vector<8x16xf32>
    %210 = vector.shape_cast %207 : vector<8x16xf32> to vector<1x8x16xf32>
    tpu.vector_store %arg4[%c0_170, %c0_171, %c208_172], %210 {strides = array<i32>} : memref<1x8x256xf32, #tpu.memory_space<vmem>>, vector<1x8x16xf32>,
    %211 = vector.extract_strided_slice %154 {offsets = [0, 252], sizes = [8, 16], strides = [1, 1]} : vector<8x288xf32> to vector<8x16xf32>
    %c0_173 = arith.constant 0 : index
    %c0_174 = arith.constant 0 : index
    %c224_175 = arith.constant 224 : index
    %212 = vector.load %arg4[%c0_173, %c0_174, %c224_175] : memref<1x8x256xf32, #tpu.memory_space<vmem>>, vector<1x8x16xf32>
    %213 = vector.shape_cast %212 : vector<1x8x16xf32> to vector<8x16xf32>
    %214 = vector.shape_cast %211 : vector<8x16xf32> to vector<1x8x16xf32>
    tpu.vector_store %arg4[%c0_173, %c0_174, %c224_175], %214 {strides = array<i32>} : memref<1x8x256xf32, #tpu.memory_space<vmem>>, vector<1x8x16xf32>,
    %215 = vector.extract_strided_slice %154 {offsets = [0, 270], sizes = [8, 16], strides = [1, 1]} : vector<8x288xf32> to vector<8x16xf32>
    %c0_176 = arith.constant 0 : index
    %c0_177 = arith.constant 0 : index
    %c240_178 = arith.constant 240 : index
    %216 = vector.load %arg4[%c0_176, %c0_177, %c240_178] : memref<1x8x256xf32, #tpu.memory_space<vmem>>, vector<1x8x16xf32>
    %217 = vector.shape_cast %216 : vector<1x8x16xf32> to vector<8x16xf32>
    %218 = vector.shape_cast %215 : vector<8x16xf32> to vector<1x8x16xf32>
    tpu.vector_store %arg4[%c0_176, %c0_177, %c240_178], %218 {strides = array<i32>} : memref<1x8x256xf32, #tpu.memory_space<vmem>>, vector<1x8x16xf32>,
    return
  }
  func.func @transform_0(%arg0: i32) -> (i32, i32, i32) {
    %c0_i32 = arith.constant 0 : i32
    %c0_i32_0 = arith.constant 0 : i32
    %c0_i32_1 = arith.constant 0 : i32
    return %arg0, %c0_i32, %c0_i32_0 : i32, i32, i32
  }
  func.func @transform_1(%arg0: i32) -> (i32, i32) {
    %c0_i32 = arith.constant 0 : i32
    %c0_i32_0 = arith.constant 0 : i32
    %c0_i32_1 = arith.constant 0 : i32
    return %c0_i32, %c0_i32_0 : i32, i32
  }
  func.func @transform_2(%arg0: i32) -> (i32, i32) {
    %c0_i32 = arith.constant 0 : i32
    %c0_i32_0 = arith.constant 0 : i32
    %c0_i32_1 = arith.constant 0 : i32
    return %c0_i32, %c0_i32_0 : i32, i32
  }
  func.func @transform_3(%arg0: i32) -> (i32, i32, i32) {
    %c0_i32 = arith.constant 0 : i32
    %c0_i32_0 = arith.constant 0 : i32
    %c0_i32_1 = arith.constant 0 : i32
    return %arg0, %c0_i32, %c0_i32_0 : i32, i32, i32
  }
}

</mosaic_0001>

<bundles_post_ra>
// kernel: conv2d_block.1
= control target key start
LH: loop header
LB: loop body
LE: loop exit
PB: predicated region body
PF: predicated region fallthrough
CT: control target
= control target key end

     0   :  { %s1181_s12 = smov 0   ;;  %s1309_s0 = inlined_call_operand.vmem [shape: f32[2,4,256], index: 0, kind: input, shape index: {}]   ;;  %s1310_s1 = inlined_call_operand.vmem [shape: f32[8,36], index: 1, kind: input, shape index: {}]   ;;  %s1311_s2 = inlined_call_operand.vmem [shape: f32[8,1], index: 2, kind: input, shape index: {}]   ;;  %s1312_s3 = inlined_call_operand.vmem [shape: f32[2,8,256], index: 3, kind: output, shape index: {}]  }
   0x1 LB: > { %s978_s13 = sadd.s32 4294967295, %s1098_s12   ;;  %p982_p0 = scmp.ge.s32.totalorder %s1098_s12, 1  ;;  %s1098_s12 = sphi %s1181_s12, %s13_s12  }
   0x2   : > { %p137_p1 = scmp.lt.s32.totalorder %s1098_s12, 3 }
   0x4   : > { %p138_p2 = pnand %p982_p0, %p137_p1 }
   0x5   : > { %p161_p3 = scmp.lt.s32.totalorder (!%p138_p2), %s978_s13, 1  ;;  %s1100_s18 = smov (!%p138_p2), 19  }
   0x6   : > { %141 = sbr.rel (%p138_p2) target bundleno = 750 (0x2ee), region = 32  ;;  %s1101_s19 = smov (!%p138_p2), 1  }
   0x7   : > { %s1102_s20 = smov (!%p138_p2), 18   ;;  %s1103_s21 = smov (!%p138_p2), 2  }
   0x8   : > { %s1104_s22 = smov (!%p138_p2), 21   ;;  %s1105_s23 = smov (!%p138_p2), 20  }
   0x9   : > { %s1106_s24 = smov (!%p138_p2), 22   ;;  %s1107_s25 = smov (!%p138_p2), 23  }
   0xa   : > { %s1108_s26 = smov (!%p138_p2), 25   ;;  %s1109_s27 = smov (!%p138_p2), 24  }
   0xb   : > { %s1314_s13 = smov (!%p161_p3, %s978_s13), 1  ;;  %s1110_s28 = smov 26   ;;  %vm171_vm0 = vcmask 568864   ;;  %v1125_v13 = vmov 0.0   ;;  %vm178_vm1 = vcmask 134152   ;;  %vm180_vm2 = vcmask 3072  }
   0xc   : > { %s994_s14 = sshll.u32 %s1314_s13, 3  ;;  %s1111_s29 = smov 27   ;;  %172 = vst.msk [vmem:[#allocation2 + $0x8] sm:$0xf] %vm171_vm0, %v1125_v13  ;;  %1002 = vmatprep.subr.mxu1 %v1125_v13  ;;  %760 = vmatprep.mubr.f32.mxu0 %v1125_v13  ;;  %vm185_vm3 = vcmask 142472   ;;  %vm192_vm4 = vcmask 281752  }
   0xd   : > { %s1195_s17 = scalar_lea.vmem %s1309_s0, %s994_s14  ;;  %s1112_s30 = smov 29   ;;  %vm197_vm5 = vcmask 150672   ;;  %vm202_vm6 = vcmask 290072   ;;  %vm209_vm7 = vcmask 429352   ;;  %vm214_vm8 = vcmask 298272  }
   0xe   : > { %v187_v0 = vld [vmem:[%s1195_s17] sm:$0xf]  ;;  %s1113_s4 = smov 28   ;;  %s1114_s5 = smov 31   ;;  %v328_v9 = vld [vmem:[%s1195_s17 + $0x4] sm:$0xf] }
   0xf   : > { %v1199_v1 = vld [vmem:[%s1195_s17] sm:$0xf]  ;;  %189 = vrot.lane.b32.xlu1 %v187_v0, %s1100_s18  ;;  %s1115_s6 = smov 32   ;;  %s1116_s7 = smov 30   ;;  %v345_v10 = vld [vmem:[%s1195_s17 + $0x4] sm:$0xf] }
  0x10   : > { %175 = vrot.lane.b32.xlu0 %v1199_v1, %s1101_s19  ;;  %v204_v2 = vld [vmem:[%s1195_s17] sm:$0xf]  ;;  %s1117_s8 = smov 33   ;;  %s1118_s9 = smov 35   ;;  %v362_v11 = vld [vmem:[%s1195_s17 + $0x4] sm:$0xf] }
  0x11   : > { %v221_v3 = vld [vmem:[%s1195_s17] sm:$0xf]  ;;  %s1119_s10 = smov 34   ;;  %s1120_s11 = smov 36   ;;  %v379_v12 = vld [vmem:[%s1195_s17 + $0x4] sm:$0xf] }
  0x12   : > { %v238_v4 = vld [vmem:[%s1195_s17] sm:$0xf]  ;;  %s1121_s14 = smov 37   ;;  %s1122_s15 = smov 39   ;;  %v396_v14 = vld [vmem:[%s1195_s17 + $0x4] sm:$0xf] }
  0x13   : > { %194 = vrot.lane.b32.xlu1 %v187_v0, %s1102_s20  ;;  %v255_v5 = vld [vmem:[%s1195_s17] sm:$0xf]  ;;  %s1123_s16 = smov 38   ;;  %s1124_s18 = smov 40   ;;  %v413_v15 = vld [vmem:[%s1195_s17 + $0x4] sm:$0xf] }
  0x14   : > { %182 = vrot.lane.b32.xlu0 %v1199_v1, %s1103_s21  ;;  %v272_v6 = vld [vmem:[%s1195_s17] sm:$0xf]  ;;  %s1126_s19 = smov 41   ;;  %s1127_s20 = smov 43   ;;  %v435_v16 = vld [vmem:[%s1195_s17 + $0x4] sm:$0xf] }
  0x15   : > { %v1209_v7 = vld [vmem:[%s1195_s17] sm:$0xf]  ;;  %s1128_s21 = smov 42   ;;  %v452_v17 = vld [vmem:[%s1195_s17 + $0x4] sm:$0xf]  ;;  %vm219_vm9 = vcmask 437672  }
  0x16   : > { %v311_v8 = vld [vmem:[%s1195_s17] sm:$0xf]  ;;  %v469_v18 = vld [vmem:[%s1195_s17 + $0x4] sm:$0xf]  ;;  %vm226_vm10 = vcmask 576952   ;;  %vm231_vm11 = vcmask 445872  }
  0x17   : > { %206 = vrot.lane.b32.xlu1 %v204_v2, %s1104_s22  ;;  %s1129_s22 = smov 45   ;;  %vm236_vm12 = vcmask 585272   ;;  %vm243_vm13 = vcmask 724552   ;;  %vm248_vm14 = vcmask 593472   ;;  %vm253_vm15 = vcmask 732872   ;;  %s1139_s17 = smov 90  }
  0x18   : > { %199 = vrot.lane.b32.xlu0 %v187_v0, %s1105_s23  ;;  %vm260_vm0 = vcmask 872152  }
  0x1b   : > { %216 = vrot.lane.b32.xlu1 %v204_v2, %s1106_s24 }
  0x1c   : > { %211 = vrot.lane.b32.xlu0 %v204_v2, %s1105_s23  ;;  %s1130_s23 = smov 46  }
  0x1f   : > { %228 = vrot.lane.b32.xlu1 %v221_v3, %s1106_s24  ;;  %s1131_s24 = smov 44  }
  0x20   : > { %223 = vrot.lane.b32.xlu0 %v221_v3, %s1107_s25  ;;  %s1132_s25 = smov 47  }
  0x23   : > { %240 = vrot.lane.b32.xlu1 %v238_v4, %s1108_s26  ;;  %s1133_s26 = smov 49  }
  0x24   : > { %233 = vrot.lane.b32.xlu0 %v221_v3, %s1109_s27 }
  0x27   : > { %250 = vrot.lane.b32.xlu1 %v238_v4, %s1110_s28 }
  0x28   : > { %245 = vrot.lane.b32.xlu0 %v238_v4, %s1109_s27  ;;  %s1134_s27 = smov 48  }
  0x2b   : > { %262 = vrot.lane.b32.xlu1 %v255_v5, %s1110_s28  ;;  %s1135_s28 = smov 50  }
  0x2c   : > { %257 = vrot.lane.b32.xlu0 %v255_v5, %s1111_s29  ;;  %s1136_s29 = smov 67  }
  0x2f   : > { %274 = vrot.lane.b32.xlu1 %v272_v6, %s1112_s30  ;;  %s1137_s30 = smov 66  }
  0x30   : > { %267 = vrot.lane.b32.xlu0 %v255_v5, %s1113_s4 }
  0x33   : > { %279 = vrot.lane.b32.xlu1 %v272_v6, %s1113_s4  ;;  %s1138_s4 = smov 68  }
  0x34   : > { %291 = vrot.lane.b32.xlu0 %v1209_v7, %s1114_s5  ;;  %s1140_s5 = smov 91  }
  0x37   : > { %306 = vrot.lane.b32.xlu1 %v1209_v7, %s1115_s6 }
  0x38   : > { %284 = vrot.lane.b32.xlu0 %v272_v6, %s1116_s7 }
  0x3b   : > { %318 = vrot.lane.b32.xlu1 %v311_v8, %s1115_s6  ;;  %s1141_s6 = smov 92  }
  0x3c   : > { %313 = vrot.lane.b32.xlu0 %v311_v8, %s1117_s8  ;;  %s1143_s8 = smov 109  }
  0x3f   : > { %330 = vrot.lane.b32.xlu1 %v328_v9, %s1118_s9  ;;  %s1144_s9 = smov 110  }
  0x40   : > { %323 = vrot.lane.b32.xlu0 %v311_v8, %s1119_s10 }
  0x43   : > { %340 = vrot.lane.b32.xlu1 %v328_v9, %s1120_s11 }
  0x44   : > { %335 = vrot.lane.b32.xlu0 %v328_v9, %s1119_s10  ;;  %s1145_s10 = smov 126  }
  0x47   : > { %352 = vrot.lane.b32.xlu1 %v345_v10, %s1120_s11  ;;  %s1147_s11 = smov 127  }
  0x48   : > { %347 = vrot.lane.b32.xlu0 %v345_v10, %s1121_s14 }
  0x4b   : > { %364 = vrot.lane.b32.xlu1 %v362_v11, %s1122_s15 }
  0x4c   : > { %357 = vrot.lane.b32.xlu0 %v345_v10, %s1123_s16 }
  0x4f   : > { %374 = vrot.lane.b32.xlu1 %v362_v11, %s1124_s18 }
  0x50   : > { %369 = vrot.lane.b32.xlu0 %v362_v11, %s1123_s16 }
  0x53   : > { %386 = vrot.lane.b32.xlu1 %v379_v12, %s1124_s18 }
  0x54   : > { %381 = vrot.lane.b32.xlu0 %v379_v12, %s1126_s19  ;;  %s995_s19 = sshll.u32 %s1314_s13, 4  ;;  %s1150_s13 = smov 114  }
  0x57   : > { %398 = vrot.lane.b32.xlu1 %v396_v14, %s1127_s20 }
  0x58   : > { %391 = vrot.lane.b32.xlu0 %v379_v12, %s1128_s21 }
  0x5b   : > { %403 = vrot.lane.b32.xlu1 %v396_v14, %s1128_s21 }
  0x5c   : > { %415 = vrot.lane.b32.xlu0 %v413_v15, %s1129_s22  ;;  %s1279_s22 = scalar_lea.vmem %s1312_s3, %s995_s19 }
  0x5f   : > { %430 = vrot.lane.b32.xlu1 %v413_v15, %s1130_s23 }
  0x60   : > { %408 = vrot.lane.b32.xlu0 %v396_v14, %s1131_s24 }
  0x63   : > { %442 = vrot.lane.b32.xlu1 %v435_v16, %s1130_s23  ;;  %s1149_s23 = smov 100  }
  0x64   : > { %437 = vrot.lane.b32.xlu0 %v435_v16, %s1132_s25  ;;  %s1152_s25 = smov 112  }
  0x67   : > { %454 = vrot.lane.b32.xlu1 %v452_v17, %s1133_s26  ;;  %s1153_s26 = smov 122  }
  0x68   : > { %447 = vrot.lane.b32.xlu0 %v435_v16, %s1134_s27 }
  0x6b   : > { %464 = vrot.lane.b32.xlu1 %v452_v17, %s1135_s28  ;;  %s1155_s28 = smov 118  }
  0x6c   : > { %459 = vrot.lane.b32.xlu0 %v452_v17, %s1134_s27  ;;  %s1154_s27 = smov 120  }
  0x6f   : > { %425 = vrot.lane.b32.xlu1 %v413_v15, %s1131_s24  ;;  %s1151_s24 = smov 124  }
  0x70   : > { %301 = vrot.lane.b32.xlu0 %v1209_v7, %s1116_s7  ;;  %s1142_s7 = smov 108  }
  0x73   : > { %476 = vrot.lane.b32.xlu1 %v469_v18, %s1137_s30  ;;  %s1157_s30 = smov 116  }
  0x74   : > { %471 = vrot.lane.b32.xlu0 %v469_v18, %s1136_s29  ;;  %s1156_s29 = smov 106  }
  0x78   : > { %481 = vrot.lane.b32.xlu0 %v469_v18, %s1138_s4  ;;  %s1158_s4 = smov 104  }
  0x81   : > { %v190_v19 = vpop.permute.xlu1 %189 }
  0x82   : > { %v176_v20 = vpop.permute.xlu0 %175 }
  0x83   : > { %179 = vst.msk [vmem:[#allocation2] sm:$0xf] %vm178_vm1, %v176_v20  ;;  %vm265_vm1 = vcmask 741072  }
  0x84   : > { %181 = vst.msk [vmem:[#allocation2] sm:$0xf] %vm180_vm2, %v1199_v1  ;;  %vm270_vm2 = vcmask 880472  }
  0x85   : > { %v195_v21 = vpop.permute.xlu1 %194 }
  0x86   : > { %v183_v22 = vpop.permute.xlu0 %182 }
  0x87   : > { %186 = vst.msk [vmem:[#allocation2] sm:$0xf] %vm185_vm3, %v183_v22  ;;  %vm277_vm3 = vcmask 1019752  }
  0x88   : > { %193 = vst.msk [vmem:[#allocation2] sm:$0xf] %vm192_vm4, %v190_v19  ;;  %vm282_vm4 = vcmask 888672  }
  0x89   : > { %198 = vst.msk [vmem:[#allocation2] sm:$0xf] %vm197_vm5, %v195_v21  ;;  %v207_v23 = vpop.permute.xlu1 %206  ;;  %vm297_vm5 = vcmask 1044472  }
  0x8a   : > { %v200_v24 = vpop.permute.xlu0 %199 }
  0x8b   : > { %203 = vst.msk [vmem:[#allocation2] sm:$0xf] %vm202_vm6, %v200_v24  ;;  %vm298_vm6 = vcmask 121860  }
  0x8c   : > { %210 = vst.msk [vmem:[#allocation2] sm:$0xf] %vm209_vm7, %v207_v23  ;;  %vm294_vm7 = vcmask 252928  }
  0x8d   : > { %v217_v25 = vpop.permute.xlu1 %216 }
  0x8e   : > { %v212_v26 = vpop.permute.xlu0 %211 }
  0x8f   : > { %215 = vst.msk [vmem:[#allocation2] sm:$0xf] %vm214_vm8, %v212_v26  ;;  %vm287_vm8 = vcmask 1028072   ;;  %v676_v26 = vld [vmem:[%s1311_s2] sm:$0xff] }
  0x90   : > { %220 = vst.msk [vmem:[#allocation2] sm:$0xf] %vm219_vm9, %v217_v25  ;;  %vm299_vm9 = vmor %vm298_vm6, %vm297_vm5  ;;  %vm372_vm5 = vcmask 577072   ;;  %vm377_vm6 = vcmask 716472   ;;  %v1148_v25 = vmov 0  }
  0x91   : > { %v229_v27 = vpop.permute.xlu1 %228  ;;  %1084 = vset.pattern.permute.xlu1 %v1148_v25  ;;  %1085 = vset.pattern.permute.xlu0 %v1148_v25 }
  0x92   : > { %v224_v28 = vpop.permute.xlu0 %223 }
  0x93   : > { %227 = vst.msk [vmem:[#allocation2] sm:$0xf] %vm226_vm10, %v224_v28  ;;  %vm309_vm10 = vcmask 126072  }
  0x94   : > { %232 = vst.msk [vmem:[#allocation2] sm:$0xf] %vm231_vm11, %v229_v27  ;;  %vm316_vm11 = vcmask 265352  }
  0x95   : > { %v241_v29 = vpop.permute.xlu1 %240 }
  0x96   : > { %v234_v30 = vpop.permute.xlu0 %233 }
  0x97   : > { %237 = vst.msk [vmem:[#allocation2] sm:$0xf] %vm236_vm12, %v234_v30  ;;  %vm321_vm12 = vcmask 134272  }
  0x98   : > { %244 = vst.msk [vmem:[#allocation2] sm:$0xf] %vm243_vm13, %v241_v29  ;;  %vm326_vm13 = vcmask 273672  }
  0x99   : > { %v251_v31 = vpop.permute.xlu1 %250 }
  0x9a   : > { %v246_v32 = vpop.permute.xlu0 %245 }
  0x9b   : > { %249 = vst.msk [vmem:[#allocation2] sm:$0xf] %vm248_vm14, %v246_v32  ;;  %vm333_vm14 = vcmask 412952  }
  0x9c   : > { %254 = vst.msk [vmem:[#allocation2] sm:$0xf] %vm253_vm15, %v251_v31  ;;  %vm338_vm15 = vcmask 281872  }
  0x9d   : > { %v263_v33 = vpop.permute.xlu1 %262 }
  0x9e   : > { %v258_v34 = vpop.permute.xlu0 %257 }
  0x9f   : > { %261 = vst.msk [vmem:[#allocation2] sm:$0xf] %vm260_vm0, %v258_v34  ;;  %vm343_vm0 = vcmask 421272  }
  0xa0   : > { %266 = vst.msk [vmem:[#allocation2] sm:$0xf] %vm265_vm1, %v263_v33  ;;  %vm350_vm1 = vcmask 560552  }
  0xa1   : > { %v275_v35 = vpop.permute.xlu1 %274 }
  0xa2   : > { %v268_v36 = vpop.permute.xlu0 %267 }
  0xa3   : > { %271 = vst.msk [vmem:[#allocation2] sm:$0xf] %vm270_vm2, %v268_v36  ;;  %vm355_vm2 = vcmask 429472  }
  0xa4   : > { %278 = vst.msk [vmem:[#allocation2] sm:$0xf] %vm277_vm3, %v275_v35  ;;  %vm360_vm3 = vcmask 568872  }
  0xa5   : > { %v280_v37 = vpop.permute.xlu1 %279 }
  0xa6   : > { %v292_v38 = vpop.permute.xlu0 %291  ;;  %283 = vst.msk [vmem:[#allocation2] sm:$0xf] %vm282_vm4, %v280_v37  ;;  %vm367_vm4 = vcmask 708152  }
  0xa7   : > { %v293_v39 = vrot.slane %v292_v38, 4 }
  0xa9   : > { %v307_v40 = vpop.permute.xlu1 %306  ;;  %v295_v42 = vsel %vm294_vm7, %v293_v39, %v292_v38  ;;  %vm384_vm7 = vcmask 855752  }
  0xaa   : > { %v285_v41 = vpop.permute.xlu0 %284 }
  0xab   : > { %288 = vst.msk [vmem:[#allocation2] sm:$0xf] %vm287_vm8, %v285_v41  ;;  %vm389_vm8 = vcmask 724672  }
  0xac   : > { %300 = vst.msk [vmem:[#allocation2] sm:$0xff] %vm299_vm9, %v295_v42  ;;  %vm394_vm9 = vcmask 864072  }
  0xad   : > { %310 = vst.msk [vmem:[#allocation2 + $0x4] sm:$0xf] %vm309_vm10, %v307_v40  ;;  %v319_v43 = vpop.permute.xlu1 %318  ;;  %vm401_vm10 = vcmask 1003352  }
  0xae   : > { %v314_v44 = vpop.permute.xlu0 %313 }
  0xaf   : > { %317 = vst.msk [vmem:[#allocation2 + $0x4] sm:$0xf] %vm316_vm11, %v314_v44  ;;  %vm406_vm11 = vcmask 872272  }
  0xb0   : > { %322 = vst.msk [vmem:[#allocation2 + $0x4] sm:$0xf] %vm321_vm12, %v319_v43  ;;  %vm421_vm12 = vcmask 1044456  }
  0xb1   : > { %v331_v45 = vpop.permute.xlu1 %330 }
  0xb2   : > { %v324_v46 = vpop.permute.xlu0 %323 }
  0xb3   : > { %327 = vst.msk [vmem:[#allocation2 + $0x4] sm:$0xf] %vm326_vm13, %v324_v46  ;;  %vm422_vm13 = vcmask 105476  }
  0xb4   : > { %334 = vst.msk [vmem:[#allocation2 + $0x4] sm:$0xf] %vm333_vm14, %v331_v45  ;;  %vm418_vm14 = vcmask 367616  }
  0xb5   : > { %v341_v47 = vpop.permute.xlu1 %340 }
  0xb6   : > { %v336_v48 = vpop.permute.xlu0 %335 }
  0xb7   : > { %339 = vst.msk [vmem:[#allocation2 + $0x4] sm:$0xf] %vm338_vm15, %v336_v48  ;;  %vm411_vm15 = vcmask 1011672  }
  0xb8   : > { %344 = vst.msk [vmem:[#allocation2 + $0x4] sm:$0xf] %vm343_vm0, %v341_v47  ;;  %vm423_vm0 = vmor %vm422_vm13, %vm421_vm12  ;;  %vm484_vm12 = vcmask 552472   ;;  %vm493_vm13 = vcmask 257024  }
  0xb9   : > { %v353_v49 = vpop.permute.xlu1 %352 }
  0xba   : > { %v348_v50 = vpop.permute.xlu0 %347 }
  0xbb   : > { %351 = vst.msk [vmem:[#allocation2 + $0x4] sm:$0xf] %vm350_vm1, %v348_v50  ;;  %vm433_vm1 = vcmask 109672  }
  0xbc   : > { %356 = vst.msk [vmem:[#allocation2 + $0x4] sm:$0xf] %vm355_vm2, %v353_v49  ;;  %vm440_vm2 = vcmask 248952  }
  0xbd   : > { %v365_v51 = vpop.permute.xlu1 %364 }
  0xbe   : > { %v358_v52 = vpop.permute.xlu0 %357 }
  0xbf   : > { %361 = vst.msk [vmem:[#allocation2 + $0x4] sm:$0xf] %vm360_vm3, %v358_v52  ;;  %vm445_vm3 = vcmask 117872  }
  0xc0   : > { %368 = vst.msk [vmem:[#allocation2 + $0x4] sm:$0xf] %vm367_vm4, %v365_v51  ;;  %vm450_vm4 = vcmask 257272  }
  0xc1   : > { %v375_v53 = vpop.permute.xlu1 %374 }
  0xc2   : > { %v370_v54 = vpop.permute.xlu0 %369 }
  0xc3   : > { %373 = vst.msk [vmem:[#allocation2 + $0x4] sm:$0xf] %vm372_vm5, %v370_v54  ;;  %vm457_vm5 = vcmask 396552  }
  0xc4   : > { %378 = vst.msk [vmem:[#allocation2 + $0x4] sm:$0xf] %vm377_vm6, %v375_v53  ;;  %vm462_vm6 = vcmask 265472  }
  0xc5   : > { %v387_v55 = vpop.permute.xlu1 %386 }
  0xc6   : > { %v382_v56 = vpop.permute.xlu0 %381 }
  0xc7   : > { %385 = vst.msk [vmem:[#allocation2 + $0x4] sm:$0xf] %vm384_vm7, %v382_v56  ;;  %vm467_vm7 = vcmask 404872  }
  0xc8   : > { %390 = vst.msk [vmem:[#allocation2 + $0x4] sm:$0xf] %vm389_vm8, %v387_v55  ;;  %vm428_vm8 = vcmask 1019872  }
  0xc9   : > { %v399_v57 = vpop.permute.xlu1 %398 }
  0xca   : > { %v392_v58 = vpop.permute.xlu0 %391 }
  0xcb   : > { %395 = vst.msk [vmem:[#allocation2 + $0x4] sm:$0xf] %vm394_vm9, %v392_v58  ;;  %vm304_vm9 = vcmask 1036272  }
  0xcc   : > { %402 = vst.msk [vmem:[#allocation2 + $0x4] sm:$0xf] %vm401_vm10, %v399_v57  ;;  %vm474_vm10 = vcmask 544152  }
  0xcd   : > { %v404_v59 = vpop.permute.xlu1 %403 }
  0xce   : > { %v416_v60 = vpop.permute.xlu0 %415  ;;  %407 = vst.msk [vmem:[#allocation2 + $0x4] sm:$0xf] %vm406_vm11, %v404_v59  ;;  %vm479_vm11 = vcmask 413072  }
  0xcf   : > { %v417_v61 = vrot.slane %v416_v60, 4 }
  0xd1   : > { %v431_v62 = vpop.permute.xlu1 %430  ;;  %v419_v0 = vsel %vm418_vm14, %v417_v61, %v416_v60  ;;  %vm1146_vm14 = vmmov 0  }
  0xd2   : > { %v409_v63 = vpop.permute.xlu0 %408  ;;  %1012 = vmatprep.mubr.msk.f32.mxu1 %vm1146_vm14, %v1125_v13  ;;  %vm864_vm14 = vcmask 654848  }
  0xd3   : > { %412 = vst.msk [vmem:[#allocation2 + $0x4] sm:$0xf] %vm411_vm15, %v409_v63  ;;  %vm651_vm15 = vcmask 736256  }
  0xd4   : > { %424 = vst.msk [vmem:[#allocation2 + $0x4] sm:$0xff] %vm423_vm0, %v419_v0  ;;  %vm631_vm0 = vcmask 744448  }
  0xd5   : > { %434 = vst.msk [vmem:[#allocation2 + $0x8] sm:$0xf] %vm433_vm1, %v431_v62  ;;  %v443_v1 = vpop.permute.xlu1 %442  ;;  %vm590_vm1 = vcmask 883712  }
  0xd6   : > { %v438_v2 = vpop.permute.xlu0 %437 }
  0xd7   : > { %441 = vst.msk [vmem:[#allocation2 + $0x8] sm:$0xf] %vm440_vm2, %v438_v2  ;;  %vm549_vm2 = vcmask 900096  }
  0xd8   : > { %446 = vst.msk [vmem:[#allocation2 + $0x8] sm:$0xf] %vm445_vm3, %v443_v1  ;;  %vm610_vm3 = vcmask 752640  }
  0xd9   : > { %v455_v3 = vpop.permute.xlu1 %454 }
  0xda   : > { %v448_v4 = vpop.permute.xlu0 %447 }
  0xdb   : > { %451 = vst.msk [vmem:[#allocation2 + $0x8] sm:$0xf] %vm450_vm4, %v448_v4  ;;  %vm569_vm4 = vcmask 891904  }
  0xdc   : > { %458 = vst.msk [vmem:[#allocation2 + $0x8] sm:$0xf] %vm457_vm5, %v455_v3  ;;  %vm528_vm5 = vcmask 1031168  }
  0xdd   : > { %v465_v5 = vpop.permute.xlu1 %464 }
  0xde   : > { %v460_v6 = vpop.permute.xlu0 %459 }
  0xdf   : > { %463 = vst.msk [vmem:[#allocation2 + $0x8] sm:$0xf] %vm462_vm6, %v460_v6  ;;  %vm515_vm6 = vcmask 261124  }
  0xe0   : > { %468 = vst.msk [vmem:[#allocation2 + $0x8] sm:$0xf] %vm467_vm7, %v465_v5  ;;  %vm686_vm7 = vcmask 1043456  }
  0xe1   : > { %v426_v7 = vpop.permute.xlu1 %425 }
  0xe2   : > { %v302_v8 = vpop.permute.xlu0 %301  ;;  %429 = vst.msk [vmem:[#allocation2 + $0x4] sm:$0xf] %vm428_vm8, %v426_v7  ;;  %vm507_vm8 = vcmask 1039360  }
  0xe3   : > { %305 = vst.msk [vmem:[#allocation2] sm:$0xf] %vm304_vm9, %v302_v8  ;;  %vm682_vm9 = vcmask 293888  }
  0xe5   : > { %v477_v10 = vpop.permute.xlu1 %476 }
  0xe6   : > { %v472_v9 = vpop.permute.xlu0 %471 }
  0xe7   : > { %475 = vst.msk [vmem:[#allocation2 + $0x8] sm:$0xf] %vm474_vm10, %v472_v9  ;;  %vm843_vm10 = vcmask 130048  }
  0xe8   : > { %480 = vst.msk [vmem:[#allocation2 + $0x8] sm:$0xf] %vm479_vm11, %v477_v10  ;;  %vm849_vm11 = vcmask 261248  }
  0xea   : > { %v486_v11 = vld [vmem:[#allocation2] sm:$0xff]  ;;  %v482_v12 = vpop.permute.xlu0 %481 }
  0xeb   : > { %491 = vst [vmem:[#allocation3] sm:$0xf] %v486_v11  ;;  %645 = vrot.lane.b32.xlu1 %v486_v11, %s1139_s17  ;;  %v644_v14 = vcombine.high %v486_v11, %v486_v11  ;;  %627 = vrot.lane.b32.xlu0 %v486_v11, %s1140_s5  ;;  %485 = vst.msk [vmem:[#allocation2 + $0x8] sm:$0xf] %vm484_vm12, %v482_v12  ;;  %v623_v15 = vcombine.low %v486_v11, %v486_v11  ;;  %vm854_vm12 = vcmask 392448  }
  0xed   : > { %492 = vst [vmem:[#allocation3 + $0x8] sm:$0xf] %v644_v14 }
  0xef   : > { %647 = vrot.lane.b32.xlu1 %v644_v14, %s1139_s17  ;;  %604 = vrot.lane.b32.xlu0 %v486_v11, %s1141_s6 }
  0xf2   : > { %v487_v16 = vld [vmem:[#allocation2 + $0x8] sm:$0xf] }
  0xf3   : > { %625 = vrot.lane.b32.xlu1 %v623_v15, %s1140_s5  ;;  %586 = vrot.lane.b32.xlu0 %v486_v11, %s1142_s7  ;;  %494 = vst.msk [vmem:[#allocation3 + $0x10] sm:$0xf] %vm493_vm13, %v487_v16  ;;  %v600_v17 = vld [vmem:[#allocation2 + $0x8] sm:$0xf]  ;;  %v660_v16 = vld [vmem:[%s1310_s1] sm:$0xff] }
  0xf4   : > { %v559_v18 = vld [vmem:[#allocation2 + $0x8] sm:$0xf] }
  0xf5   : > { %v518_v19 = vld [vmem:[#allocation2 + $0x8] sm:$0xf] }
  0xf6   : > { %v1088_v20 = vld [vmem:[#allocation2 + $0x8] ss:$0 sps:$4 sm:$0xff]  }
  0xf7   : > { %584 = vrot.lane.b32.xlu1 %v623_v15, %s1142_s7  ;;  %563 = vrot.lane.b32.xlu0 %v486_v11, %s1143_s8  ;;  %v641_v21 = vld [vmem:[#allocation2 + $0x8] sm:$0xf] }
  0xf8   : > { %v1089_v22 = vld [vmem:[#allocation2 + $0x8] ss:$0 sps:$4 sm:$0xff]  }
  0xf9   : > { %v1090_v23 = vld [vmem:[#allocation2 + $0x8] ss:$0 sps:$4 sm:$0xff]  }
  0xfa   : > { %v1091_v24 = vld [vmem:[#allocation2 + $0x8] ss:$0 sps:$4 sm:$0xff]  }
  0xfb   : > { %545 = vrot.lane.b32.xlu0 %v486_v11, %s1144_s9  ;;  %543 = vrot.lane.b32.xlu1 %v623_v15, %s1144_s9 }
  0xff   : > { %606 = vrot.lane.b32.xlu0 %v644_v14, %s1141_s6  ;;  %608 = vrot.lane.b32.xlu1 %v600_v17, %s1141_s6 }
 0x103   : > { %565 = vrot.lane.b32.xlu0 %v644_v14, %s1143_s8  ;;  %567 = vrot.lane.b32.xlu1 %v559_v18, %s1143_s8 }
 0x107   : > { %524 = vrot.lane.b32.xlu0 %v644_v14, %s1145_s10  ;;  %526 = vrot.lane.b32.xlu1 %v518_v19, %s1145_s10 }
 0x10b   : > { %649 = vrot.lane.b32.xlu0 %v641_v21, %s1139_s17  ;;  %629 = vrot.lane.b32.xlu1 %v1088_v20, %s1140_s5  ;;  %s1159_s17 = smov 102   ;;  %s1160_s5 = smov 98  }
 0x10f   : > { %522 = vrot.lane.b32.xlu0 %v486_v11, %s1145_s10  ;;  %588 = vrot.lane.b32.xlu1 %v1089_v22, %s1142_s7 }
 0x113   : > { %503 = vrot.lane.b32.xlu0 %v486_v11, %s1147_s11  ;;  %547 = vrot.lane.b32.xlu1 %v1090_v23, %s1144_s9 }
 0x117   : > { %501 = vrot.lane.b32.xlu0 %v623_v15, %s1147_s11  ;;  %505 = vrot.lane.b32.xlu1 %v1091_v24, %s1147_s11 }
 0x11b   : > { %679 = vperm.xlu1 %1084, %v676_v26  }
 0x15d   : > { %v646_v27 = vpop.permute.xlu1 %645  ;;  %v628_v28 = vpop.permute.xlu0 %627 }
 0x161   : > { %v648_v29 = vpop.permute.xlu1 %647  ;;  %v605_v30 = vpop.permute.xlu0 %604 }
 0x162   : > { %v652_v31 = vsel %vm651_vm15, %v646_v27, %v648_v29 }
 0x163   : > { %657 = vst [vmem:[#allocation3 + $0x60] sm:$0xf] %v652_v31 }
 0x165   : > { %v626_v32 = vpop.permute.xlu1 %625  ;;  %v587_v33 = vpop.permute.xlu0 %586 }
 0x166   : > { %v632_v34 = vsel %vm631_vm0, %v626_v32, %v628_v28 }
 0x167   : > { %637 = vst [vmem:[#allocation3 + $0x48] sm:$0xf0] %v632_v34 }
 0x169   : > { %v585_v35 = vpop.permute.xlu1 %584  ;;  %v564_v36 = vpop.permute.xlu0 %563 }
 0x16a   : > { %v591_v37 = vsel %vm590_vm1, %v585_v35, %v587_v33  ;;  %v673_v1 = vld [vmem:[#allocation3 + $0x60] sm:$0xf] }
 0x16b   : > { %596 = vst [vmem:[#allocation3 + $0x30] sm:$0xf0] %v591_v37 }
 0x16d   : > { %v544_v38 = vpop.permute.xlu1 %543  ;;  %v546_v39 = vpop.permute.xlu0 %545 }
 0x16e   : > { %v550_v40 = vsel %vm549_vm2, %v544_v38, %v546_v39 }
 0x16f   : > { %555 = vst [vmem:[#allocation3 + $0x18] sm:$0xf0] %v550_v40 }
 0x171   : > { %v609_v41 = vpop.permute.xlu1 %608  ;;  %v607_v42 = vpop.permute.xlu0 %606 }
 0x172   : > { %618 = vst.msk [vmem:[#allocation3 + $0x58] sm:$0xf] %vm493_vm13, %v609_v41  ;;  %v611_v43 = vsel %vm610_vm3, %v605_v30, %v607_v42  ;;  %v612_v44 = vsel %vm610_vm3, %v607_v42, %v609_v41  ;;  %vm884_vm3 = vcmask 1048448  }
 0x173   : > { %616 = vst [vmem:[#allocation3 + $0x48] sm:$0xf] %v611_v43  ;;  %617 = vst [vmem:[#allocation3 + $0x50] sm:$0xf] %v612_v44 }
 0x175   : > { %v568_v45 = vpop.permute.xlu1 %567  ;;  %v566_v46 = vpop.permute.xlu0 %565 }
 0x176   : > { %577 = vst.msk [vmem:[#allocation3 + $0x40] sm:$0xf] %vm493_vm13, %v568_v45  ;;  %v570_v47 = vsel %vm569_vm4, %v564_v36, %v566_v46  ;;  %v571_v48 = vsel %vm569_vm4, %v566_v46, %v568_v45 }
 0x177   : > { %575 = vst [vmem:[#allocation3 + $0x30] sm:$0xf] %v570_v47  ;;  %576 = vst [vmem:[#allocation3 + $0x38] sm:$0xf] %v571_v48 }
 0x179   : > { %v527_v49 = vpop.permute.xlu1 %526  ;;  %v525_v50 = vpop.permute.xlu0 %524 }
 0x17a   : > { %536 = vst.msk [vmem:[#allocation3 + $0x28] sm:$0xf] %vm493_vm13, %v527_v49  ;;  %v530_v51 = vsel %vm528_vm5, %v525_v50, %v527_v49  ;;  %v670_v6 = vld [vmem:[#allocation3 + $0x48] sm:$0xff] }
 0x17b   : > { %535 = vst [vmem:[#allocation3 + $0x20] sm:$0xf] %v530_v51 }
 0x17d   : > { %v630_v52 = vpop.permute.xlu1 %629  ;;  %v650_v53 = vpop.permute.xlu0 %649 }
 0x17e   : > { %v633_v54 = vsel %vm631_vm0, %v628_v28, %v630_v52  ;;  %639 = vst.msk [vmem:[#allocation3 + $0x58] sm:$0xf0] %vm515_vm6, %v630_v52  ;;  %v653_v55 = vsel %vm651_vm15, %v648_v29, %v650_v53  ;;  %v667_v11 = vld [vmem:[#allocation3 + $0x30] sm:$0xff]  ;;  %vm869_vm15 = vcmask 786048   ;;  %vm874_vm0 = vcmask 917248  }
 0x17f   : > { %659 = vst.msk [vmem:[#allocation3 + $0x70] sm:$0xf] %vm493_vm13, %v650_v53  ;;  %638 = vst [vmem:[#allocation3 + $0x50] sm:$0xf0] %v633_v54  ;;  %vm859_vm13 = vcmask 523648  }
 0x180   : > { %658 = vst [vmem:[#allocation3 + $0x68] sm:$0xf] %v653_v55 }
 0x181   : > { %v589_v56 = vpop.permute.xlu1 %588  ;;  %v523_v57 = vpop.permute.xlu0 %522 }
 0x182   : > { %v592_v58 = vsel %vm590_vm1, %v587_v33, %v589_v56  ;;  %598 = vst.msk [vmem:[#allocation3 + $0x40] sm:$0xf0] %vm515_vm6, %v589_v56  ;;  %v529_v59 = vsel %vm528_vm5, %v523_v57, %v525_v50  ;;  %vm915_vm1 = vcmask 818176  }
 0x183   : > { %597 = vst [vmem:[#allocation3 + $0x38] sm:$0xf0] %v592_v58  ;;  %534 = vst [vmem:[#allocation3 + $0x18] sm:$0xf] %v529_v59 }
 0x185   : > { %v548_v60 = vpop.permute.xlu1 %547  ;;  %v504_v61 = vpop.permute.xlu0 %503  ;;  %v672_v2 = vld [vmem:[#allocation3 + $0x58] sm:$0xff] }
 0x186   : > { %v675_v62 = vld [vmem:[#allocation3 + $0x70] sm:$0xf]  ;;  %v551_v63 = vsel %vm549_vm2, %v546_v39, %v548_v60  ;;  %557 = vst.msk [vmem:[#allocation3 + $0x28] sm:$0xf0] %vm515_vm6, %v548_v60  ;;  %vm881_vm2 = vcmask 932864  }
 0x187   : > { %1003 = vmatpush3.msk.msra.mxu1 %vm686_vm7, %v675_v62  ;;  %v674_v0 = vld [vmem:[#allocation3 + $0x68] sm:$0xf]  ;;  %556 = vst [vmem:[#allocation3 + $0x20] sm:$0xf0] %v551_v63  ;;  %v671_v3 = vld [vmem:[#allocation3 + $0x50] sm:$0xff] }
 0x188   : > { %987 = vmatprep.subr.msk.mxu0 %vm686_vm7, %v674_v0  ;;  %1004 = vmatprep.subr.mxu1 %v1125_v13 }
 0x189   : > { %988 = vmatpush1.msk.msra.mxu0 %vm686_vm7, %v673_v1  ;;  %1005 = vmatpush3.msra.mxu1 %v672_v2  ;;  %v506_v4 = vpop.permute.xlu1 %505  ;;  %v502_v5 = vpop.permute.xlu0 %501  ;;  %v669_v7 = vld [vmem:[#allocation3 + $0x40] sm:$0xff] }
 0x18a   : > { %720 = vmatprep.subr.mxu0 %v671_v3  ;;  %1006 = vmatprep.subr.mxu1 %v1125_v13  ;;  %v509_v8 = vsel %vm507_vm8, %v504_v61, %v506_v4  ;;  %516 = vst.msk [vmem:[#allocation3 + $0x10] sm:$0xf0] %vm515_vm6, %v506_v4  ;;  %v508_v9 = vsel %vm507_vm8, %v502_v5, %v504_v61  ;;  %v668_v10 = vld [vmem:[#allocation3 + $0x38] sm:$0xff] }
 0x18b   : > { %721 = vmatpush1.msra.mxu0 %v670_v6  ;;  %1007 = vmatpush3.msra.mxu1 %v669_v7  ;;  %514 = vst [vmem:[#allocation3 + $0x8] sm:$0xf0] %v509_v8  ;;  %513 = vst [vmem:[#allocation3] sm:$0xf0] %v508_v9  ;;  %v664_v15 = vld [vmem:[#allocation3 + $0x18] sm:$0xff] }
 0x18c   : > { %722 = vmatprep.subr.mxu0 %v668_v10  ;;  %1008 = vmatprep.subr.mxu1 %v1125_v13 }
 0x18d   : > { %723 = vmatpush1.msra.mxu0 %v667_v11  ;;  %v666_v12 = vld [vmem:[#allocation3 + $0x28] sm:$0xff] }
 0x18e   : > { %1009 = vmatpush3.msra.mxu1 %v666_v12  ;;  %v665_v14 = vld [vmem:[#allocation3 + $0x20] sm:$0xff] }
 0x18f   : > { %724 = vmatprep.subr.mxu0 %v665_v14  ;;  %1010 = vmatprep.subr.mxu1 %v1125_v13 }
 0x190   : > { %725 = vmatpush1.msra.mxu0 %v664_v15 }
 0x191   : > { %v663_v17 = vld [vmem:[#allocation3 + $0x10] sm:$0xff] }
 0x192   : > { %1011 = vmatpush3.msra.mxu1 %v663_v17  ;;  %v662_v18 = vld [vmem:[#allocation3 + $0x8] sm:$0xff]  ;;  %v661_v19 = vld [vmem:[#allocation3] sm:$0xff] }
 0x193   : > { %726 = vmatprep.subr.mxu0 %v662_v18  ;;  %1013 = vmatmul.mubr.msk.f32.vlgmr.msra.gmra.mxu1 %vm682_vm9, %v660_v16 }
 0x194   : > { %727 = vmatpush1.msra.mxu0 %v661_v19 }
 0x195   : > { %989 = vmatmul.mubr.msk.f32.vlgmr.msra.gmra.mxu0 %vm682_vm9, %v660_v16 }
 0x196   : > { %v680_v20 = vpop.permute.xlu1 %679 }
 0x253   : > { %v833_v21 = vpop.f32.mrf.mxu1 }
 0x254   : > { %v834_v22 = vadd.f32 %v833_v21, %v680_v20 }
 0x255   : > { %v762_v23 = vpop.f32.mrf.mxu0  ;;  %v1014_v13 = vpop.f32.mrf.mxu1 }
 0x256   : > { %v839_v24 = vmul.f32 0.02, %v834_v22  ;;  %v763_v25 = vadd.f32 %v762_v23, %v680_v20 }
 0x257   : > { %v764_v26 = vpop.f32.mrf.mxu0 }
 0x258   : > { %v842_v27 = vmax.f32 %v834_v22, %v839_v24  ;;  %v837_v28 = vmul.f32 0.02, %v763_v25  ;;  %v765_v29 = vadd.f32 %v764_v26, %v680_v20 }
 0x25a   : > { %v840_v30 = vmax.f32 %v763_v25, %v837_v28  ;;  %913 = vrot.lane.b32.xlu0 %v842_v27, %s1149_s23  ;;  %v838_v31 = vmul.f32 0.02, %v765_v29 }
 0x25c   : > { %846 = vrot.lane.b32.xlu1 %v840_v30, %s1145_s10  ;;  %844 = vst.msk [vmem:[%s1279_s22] sm:$0xff] %vm843_vm10, %v840_v30  ;;  %v841_v32 = vmax.f32 %v765_v29, %v838_v31 }
 0x25e   : > { %877 = vrot.lane.b32.xlu0 %v840_v30, %s1150_s13 }
 0x260   : > { %851 = vrot.lane.b32.xlu1 %v840_v30, %s1151_s24 }
 0x262   : > { %886 = vrot.lane.b32.xlu0 %v841_v32, %s1152_s25 }
 0x264   : > { %856 = vrot.lane.b32.xlu1 %v840_v30, %s1153_s26 }
 0x266   : > { %890 = vrot.lane.b32.xlu0 %v841_v32, %s1144_s9 }
 0x268   : > { %861 = vrot.lane.b32.xlu1 %v840_v30, %s1154_s27 }
 0x26a   : > { %894 = vrot.lane.b32.xlu0 %v841_v32, %s1142_s7 }
 0x26c   : > { %866 = vrot.lane.b32.xlu1 %v840_v30, %s1155_s28 }
 0x26e   : > { %898 = vrot.lane.b32.xlu0 %v841_v32, %s1156_s29 }
 0x270   : > { %871 = vrot.lane.b32.xlu1 %v840_v30, %s1157_s30 }
 0x272   : > { %902 = vrot.lane.b32.xlu0 %v841_v32, %s1158_s4 }
 0x274   : > { %911 = vrot.lane.b32.xlu1 %v841_v32, %s1149_s23 }
 0x276   : > { %906 = vrot.lane.b32.xlu0 %v841_v32, %s1159_s17 }
 0x278   : > { %879 = vrot.lane.b32.xlu1 %v841_v32, %s1150_s13 }
 0x27a   : > { %919 = vrot.lane.b32.xlu0 %v842_v27, %s1160_s5 }
 0x2cc   : > { %v914_v33 = vpop.permute.xlu0 %913 }
 0x2ce   : > { %v847_v34 = vpop.permute.xlu1 %846 }
 0x2cf   : > { %850 = vst.msk [vmem:[%s1279_s22] sm:$0xff] %vm849_vm11, %v847_v34 }
 0x2d0   : > { %v878_v35 = vpop.permute.xlu0 %877 }
 0x2d2   : > { %v852_v36 = vpop.permute.xlu1 %851 }
 0x2d3   : > { %855 = vst.msk [vmem:[%s1279_s22] sm:$0xff] %vm854_vm12, %v852_v36 }
 0x2d4   : > { %v887_v37 = vpop.permute.xlu0 %886 }
 0x2d5   : > { %889 = vst.msk [vmem:[%s1279_s22 + $0x8] sm:$0xff] %vm843_vm10, %v887_v37 }
 0x2d6   : > { %v857_v38 = vpop.permute.xlu1 %856 }
 0x2d7   : > { %860 = vst.msk [vmem:[%s1279_s22] sm:$0xff] %vm859_vm13, %v857_v38 }
 0x2d8   : > { %v891_v39 = vpop.permute.xlu0 %890 }
 0x2d9   : > { %893 = vst.msk [vmem:[%s1279_s22 + $0x8] sm:$0xff] %vm849_vm11, %v891_v39 }
 0x2da   : > { %v862_v40 = vpop.permute.xlu1 %861 }
 0x2db   : > { %865 = vst.msk [vmem:[%s1279_s22] sm:$0xff] %vm864_vm14, %v862_v40 }
 0x2dc   : > { %v895_v41 = vpop.permute.xlu0 %894 }
 0x2dd   : > { %897 = vst.msk [vmem:[%s1279_s22 + $0x8] sm:$0xff] %vm854_vm12, %v895_v41 }
 0x2de   : > { %v867_v42 = vpop.permute.xlu1 %866 }
 0x2df   : > { %870 = vst.msk [vmem:[%s1279_s22] sm:$0xff] %vm869_vm15, %v867_v42 }
 0x2e0   : > { %v899_v43 = vpop.permute.xlu0 %898 }
 0x2e1   : > { %901 = vst.msk [vmem:[%s1279_s22 + $0x8] sm:$0xff] %vm859_vm13, %v899_v43 }
 0x2e2   : > { %v872_v44 = vpop.permute.xlu1 %871 }
 0x2e3   : > { %875 = vst.msk [vmem:[%s1279_s22] sm:$0xff] %vm874_vm0, %v872_v44 }
 0x2e4   : > { %v903_v45 = vpop.permute.xlu0 %902 }
 0x2e5   : > { %905 = vst.msk [vmem:[%s1279_s22 + $0x8] sm:$0xff] %vm864_vm14, %v903_v45 }
 0x2e6   : > { %v912_v46 = vpop.permute.xlu1 %911 }
 0x2e7   : > { %v916_v48 = vsel %vm915_vm1, %v912_v46, %v914_v33 }
 0x2e8   : > { %v907_v47 = vpop.permute.xlu0 %906 }
 0x2e9   : > { %909 = vst.msk [vmem:[%s1279_s22 + $0x8] sm:$0xff] %vm869_vm15, %v907_v47 }
 0x2ea   : > { %918 = vst.msk [vmem:[%s1279_s22 + $0x8] sm:$0xff] %vm874_vm0, %v916_v48  ;;  %v880_v49 = vpop.permute.xlu1 %879 }
 0x2eb   : > { %v882_v50 = vsel %vm881_vm2, %v878_v35, %v880_v49 }
 0x2ec   : > { %885 = vst.msk [vmem:[%s1279_s22] sm:$0xff] %vm884_vm3, %v882_v50  ;;  %v920_v51 = vpop.permute.xlu0 %919 }
 0x2ed   : > { %922 = vst.msk [vmem:[%s1279_s22 + $0x8] sm:$0xff] %vm884_vm3, %v920_v51 }
 0x2ee PF: > { %s13_s12 = sadd.s32 1, %s1098_s12  }
 0x2ef   : > { %p10_p4 = scmp.ge.s32.totalorder %s13_s12, 4  }
 0x2f1   :  { %12 = sbr.rel (!%p10_p4) target bundleno = 1 (0x1), region = 62 }

</bundles_post_ra>
